<compile_context>
chip_gen: v7x
topology: tpu7x:2x2x1
jax: 0.10.0
libtpu: 0.0.40
codegen_flags: <defaults>
</compile_context>

<pallas_src>
import functools

import jax
import jax.numpy as jnp
from jax.experimental import pallas as pl
from jax.experimental.pallas import tpu as pltpu


# ----------------------------- small helpers ---------------------------------

_HEADROOM = 4 << 20          # VMEM slack left for Mosaic-internal scratch
MIN_RESIDENT_TM = 64         # smallest batch tile worth the all-resident path


def _round_up(n, m):
    return ((n + m - 1) // m) * m


def _cdiv(a, b):
    return -(-a // b)


def _pad2(a, rows, cols):
    pr, pc = rows - a.shape[0], cols - a.shape[1]
    if pr or pc:
        a = jnp.pad(a, ((0, pr), (0, pc)))
    return a


def _sublane_multiple(*dtypes):
    """Sublane granule so every BlockSpec row count is layout-native."""
    g = 8
    for dt in dtypes:
        g = max(g, 32 // max(1, jnp.dtype(dt).itemsize))
    return g


def _chip_defaults():
    """(vmem_budget_bytes, mxu_dim) for the local TPU generation.

    v5e/v6e have 128 MiB physical VMEM -> ~100 MiB scoped budget; v7x has
    64 MiB -> stay at 48 MiB.  v6e/v7x MXUs are 256x256 (bf16), v5e is 128x128.
    """
    vmem_budget = 48 << 20          # conservative default (v7x-safe)
    mxu_dim = 128
    try:
        cap = pltpu.get_tpu_info().vmem_capacity_bytes
        if cap >= (96 << 20):       # v5e / v6e
            vmem_budget = 100 << 20
    except Exception:
        pass
    try:
        kind = jax.devices()[0].device_kind.lower()
        if ("v6" in kind) or ("7" in kind):
            mxu_dim = 256
    except Exception:
        pass
    return vmem_budget, mxu_dim


def _pad_dim(d, mxu_dim):
    # Lane-dense padding: always a multiple of 128; use 256-deep tiles on
    # 256x256-MXU chips once the true dim is big enough to benefit.
    if mxu_dim >= 256 and d >= 256:
        return _round_up(d, 256)
    return _round_up(d, 128)


# ----------------------------- kernel bodies ----------------------------------


def _mlp_kernel_resident(n_layers, compute_dtype, *refs):
    """refs = (x_ref, w0, b0, ..., w_{L-1}, b_{L-1}, out_ref).

    All weights/biases are VMEM-resident (constant block index across the batch
    grid).  x is cast to the MXU dtype in-kernel (free VPU filler under MXU).
    """
    x_ref = refs[0]
    out_ref = refs[-1]
    params = refs[1:-1]

    h = x_ref[...].astype(compute_dtype)
    for layer in range(n_layers):
        w = params[2 * layer][...]
        b = params[2 * layer + 1][...]                # f32 (1, D_out_pad)
        acc = jnp.dot(h, w, preferred_element_type=jnp.float32) + b
        if layer < n_layers - 1:
            h = jnp.maximum(acc, 0.0).astype(compute_dtype)   # hidden ReLU
        else:
            h = acc                                           # output act = None
    out_ref[...] = h.astype(out_ref.dtype)


def _mlp_kernel_ktiled(n_layers, compute_dtype, *refs):
    """K-tiled layer 0: grid = (batch tiles, K tiles of the input features).

    refs = (x_ref(tm,tk), w0_ref(tk,D1), b0, w1, b1, ..., out_ref, acc_ref).
    acc_ref is an f32 VMEM accumulator for layer 0; remaining layers run once
    at the last K step.
    """
    x_ref = refs[0]
    out_ref = refs[-2]
    acc_ref = refs[-1]
    params = refs[1:-2]

    k = pl.program_id(1)

    @pl.when(k == 0)
    def _():
        acc_ref[...] = jnp.zeros_like(acc_ref)

    x = x_ref[...].astype(compute_dtype)
    acc_ref[...] += jnp.dot(x, params[0][...], preferred_element_type=jnp.float32)

    @pl.when(k == pl.num_programs(1) - 1)
    def _():
        h = acc_ref[...] + params[1][...]             # layer-0 bias (f32)
        if n_layers > 1:
            h = jnp.maximum(h, 0.0).astype(compute_dtype)
            for layer in range(1, n_layers):
                w = params[2 * layer][...]
                b = params[2 * layer + 1][...]
                acc = jnp.dot(h, w, preferred_element_type=jnp.float32) + b
                if layer < n_layers - 1:
                    h = jnp.maximum(acc, 0.0).astype(compute_dtype)
                else:
                    h = acc
        out_ref[...] = h.astype(out_ref.dtype)


# --------------------------- parameter packing --------------------------------


def pack_params(weights, biases, *, compute_dtype=jnp.bfloat16,
                force_ktiled=False, tk0=None, vmem_budget_bytes=None):
    """One-time packing of the MLP parameters.

    Pads every feature dim to a lane-dense multiple, casts weights to the MXU
    dtype and biases to f32, and decides whether the first-layer weight must be
    K-tiled (too large to keep VMEM-resident).  Call once; reuse per forward.

    weights: list of (in_dim_l, out_dim_l) arrays (transpose of torch layout)
    biases:  list of (out_dim_l,) or (1, out_dim_l) arrays
    """
    assert len(weights) == len(biases)
    n_layers = len(weights)
    vmem_budget, mxu_dim = _chip_defaults()
    if vmem_budget_bytes is not None:
        vmem_budget = int(vmem_budget_bytes)

    dims = [int(weights[0].shape[0])] + [int(w.shape[1]) for w in weights]
    dims_p = [_pad_dim(d, mxu_dim) for d in dims]
    lane0 = 256 if (mxu_dim >= 256 and dims[0] >= 256) else 128

    c_item = jnp.dtype(compute_dtype).itemsize
    w_bytes = sum(dims_p[l] * dims_p[l + 1] for l in range(n_layers)) * c_item
    b_bytes = sum(dims_p[1:]) * 4
    resident2 = 2 * (w_bytes + b_bytes)           # worst case: double-buffered
    per_row = 2 * dims_p[0] * 4 + 2 * dims_p[-1] * 4 + 8 * max(dims_p)
    fits = (vmem_budget - resident2 - _HEADROOM) // per_row >= MIN_RESIDENT_TM

    if force_ktiled or not fits:
        # Block the first-layer weight along its contraction (input-feature)
        # axis so only a (tk0, D1) slab must be VMEM-resident at a time.
        if tk0 is None:
            rest2 = resident2 - 2 * dims_p[0] * dims_p[1] * c_item
            w0_row = dims_p[1] * c_item
            slab_budget = max(2 * lane0 * w0_row,
                              (vmem_budget - rest2 - _HEADROOM) // 3)
            tk0 = max(lane0, (slab_budget // (2 * w0_row)) // lane0 * lane0)
        tk0 = int(min(tk0, dims_p[0]))
        nk = _cdiv(dims_p[0], tk0)
        dims_p[0] = nk * tk0                      # keep all K tiles full (zeros)
    else:
        tk0 = None

    weights_p, biases_p = [], []
    for l, (w, b) in enumerate(zip(weights, biases)):
        weights_p.append(
            _pad2(jnp.asarray(w), dims_p[l], dims_p[l + 1]).astype(compute_dtype))
        biases_p.append(
            _pad2(jnp.asarray(b, jnp.float32).reshape(1, -1), 1,
                  dims_p[l + 1]).astype(jnp.float32))

    return dict(weights=weights_p, biases=biases_p, dims=dims, dims_p=dims_p,
                compute_dtype=compute_dtype, tk0=tk0, vmem_budget=vmem_budget)


# ------------------------------ forward wrapper --------------------------------


def fully_connected_network(x, params, *, block_m: int = 512, out_dtype=None,
                            resident_single_buffer=None):
    """Fused MLP forward.  `params` comes from `pack_params` (packed once)."""
    weights_p, biases_p = params["weights"], params["biases"]
    dims, dims_p = params["dims"], params["dims_p"]
    compute_dtype, tk0 = params["compute_dtype"], params["tk0"]
    vmem_budget = params["vmem_budget"]
    n_layers = len(weights_p)

    batch, in_dim = x.shape
    assert in_dim == dims[0], "input feature dim mismatch with packed params"
    out_dim = dims[-1]
    out_dtype = x.dtype if out_dtype is None else out_dtype

    x_item = jnp.dtype(x.dtype).itemsize
    o_item = jnp.dtype(out_dtype).itemsize
    c_item = jnp.dtype(compute_dtype).itemsize
    w_bytes = sum(int(w.size) * w.dtype.itemsize for w in weights_p)
    b_bytes = sum(int(b.size) * 4 for b in biases_p)

    # ---- batch tile: VMEM-accounted cap, then minimal padding / even grid ----
    if tk0 is None:
        resident2 = 2 * (w_bytes + b_bytes)                     # 2x if dbl-buffered
        per_row = (2 * dims_p[0] * x_item + 2 * dims_p[-1] * o_item
                   + 8 * max(dims_p))                           # live f32 intermediates
    else:
        w0_bytes = dims_p[0] * dims_p[1] * c_item
        resident2 = (2 * (w_bytes - w0_bytes + b_bytes)
                     + 2 * tk0 * dims_p[1] * c_item)            # w0 slab dbl-buffered
        per_row = (2 * tk0 * x_item + 2 * dims_p[-1] * o_item
                   + 4 * dims_p[1] + 8 * max(dims_p[1:]))       # + f32 accumulator
    granule = _sublane_multiple(x.dtype, out_dtype)
    avail = vmem_budget - resident2 - _HEADROOM
    tm_cap = max(granule, (avail // per_row) // granule * granule) if avail > 0 else granule
    tile = min(_round_up(block_m, granule), tm_cap)

    n_tiles = _cdiv(batch, tile)
    if batch > 16:                      # >=2 even tiles so both v7x TCs are busy
        n_tiles = max(2, n_tiles + (n_tiles & 1))
    tm = _round_up(_cdiv(batch, n_tiles), granule)
    batch_p = n_tiles * tm

    # ---- input: pad only if needed; MXU-dtype cast happens inside the kernel -
    if (batch_p != batch) or (dims_p[0] != in_dim):
        x_in = _pad2(x, batch_p, dims_p[0])
    else:
        x_in = x

    args = [x_in]
    for w, b in zip(weights_p, biases_p):
        args.extend([w, b])

    # advisory cost estimate for the padded work actually executed
    flops = 2 * batch_p * sum(dims_p[l] * dims_p[l + 1] for l in range(n_layers))
    bytes_accessed = (batch_p * dims_p[0] * x_item + w_bytes + b_bytes
                      + batch_p * dims_p[-1] * o_item)
    cost = pl.CostEstimate(flops=flops, transcendentals=0,
                           bytes_accessed=bytes_accessed)

    # single-buffer resident params only when they are a meaningful VMEM slice
    if resident_single_buffer is None:
        resident_single_buffer = 2 * (w_bytes + b_bytes) > (vmem_budget >> 3)

    def build_call(single_buffer):
        # Weights/biases use a constant block index -> DMA'd once, VMEM-resident.
        # Single-buffering them halves their VMEM footprint (data is identical
        # every step, so buffering count cannot change results).
        res = dict(pipeline_mode=pl.Buffered(1)) if single_buffer else {}
        if tk0 is None:
            grid = (n_tiles,)
            in_specs = [pl.BlockSpec((tm, dims_p[0]), lambda i: (i, 0))]
            for l in range(n_layers):
                in_specs.append(pl.BlockSpec(weights_p[l].shape, lambda i: (0, 0), **res))
                in_specs.append(pl.BlockSpec(biases_p[l].shape, lambda i: (0, 0), **res))
            out_specs = pl.BlockSpec((tm, dims_p[-1]), lambda i: (i, 0))
            scratch = []
            kernel = functools.partial(_mlp_kernel_resident, n_layers, compute_dtype)
            sem = ("parallel",)
        else:
            nk = dims_p[0] // tk0
            grid = (n_tiles, nk)                      # reduction axis innermost
            in_specs = [
                pl.BlockSpec((tm, tk0), lambda i, k: (i, k)),
                pl.BlockSpec((tk0, dims_p[1]), lambda i, k: (k, 0)),
                pl.BlockSpec(biases_p[0].shape, lambda i, k: (0, 0), **res),
            ]
            for l in range(1, n_layers):
                in_specs.append(pl.BlockSpec(weights_p[l].shape, lambda i, k: (0, 0), **res))
                in_specs.append(pl.BlockSpec(biases_p[l].shape, lambda i, k: (0, 0), **res))
            out_specs = pl.BlockSpec((tm, dims_p[-1]), lambda i, k: (i, 0))
            scratch = [pltpu.VMEM((tm, dims_p[1]), jnp.float32)]
            kernel = functools.partial(_mlp_kernel_ktiled, n_layers, compute_dtype)
            sem = ("parallel", "arbitrary")
        return pl.pallas_call(
            kernel,
            out_shape=jax.ShapeDtypeStruct((batch_p, dims_p[-1]), out_dtype),
            grid=grid,
            in_specs=in_specs,
            out_specs=out_specs,
            scratch_shapes=scratch,
            compiler_params=pltpu.CompilerParams(
                dimension_semantics=sem,
                vmem_limit_bytes=int(vmem_budget),   # ~100 MiB v5e/v6e, 48 MiB v7x
            ),
            cost_estimate=cost,
        )

    if resident_single_buffer:
        try:
            out = build_call(True)(*args)
        except Exception:
            # pl.Buffered(1) unsupported by this jax/Mosaic build: fall back to
            # default double-buffered resident params (identical results).
            out = build_call(False)(*args)
    else:
        out = build_call(False)(*args)

    # Strip batch / lane padding.  (Output stays lane-padded to >=128 inside the
    # kernel for unmasked vst; out_dtype=bf16 halves the padded writeback.)
    return out[:batch, :out_dim]


# ------------------------------ test helpers ----------------------------------


def init_params(key, input_dim, hidden_dims, output_dim):
    """Deterministic init mimicking torch.nn.Linear's U(-1/sqrt(in), 1/sqrt(in))."""
    dims_in = [input_dim, *hidden_dims]
    dims_out = [*hidden_dims, output_dim]
    weights, biases = [], []
    for d_in, d_out in zip(dims_in, dims_out):
        key, kw, kb = jax.random.split(key, 3)
        bound = 1.0 / (d_in ** 0.5)
        # Stored as (in, out) == transpose of torch's (out, in) weight.
        weights.append(jax.random.uniform(kw, (d_in, d_out), jnp.float32, -bound, bound))
        biases.append(jax.random.uniform(kb, (1, d_out), jnp.float32, -bound, bound))
    return weights, biases


def reference_forward(x, weights, biases):
    """Pure-JAX reference of the PyTorch module's forward (default config)."""
    h = x
    n = len(weights)
    for i, (w, b) in enumerate(zip(weights, biases)):
        h = h @ w + b
        if i < n - 1:
            h = jnp.maximum(h, 0.0)
    return h


if __name__ == "__main__":
    # Small shapes consistent with the module: a 2-hidden-layer MLP.
    batch = 300            # not a multiple of the tile -> exercises padding path
    input_dim = 32
    hidden_dims = [64, 48]
    output_dim = 16

    key = jax.random.PRNGKey(0)
    key, kx = jax.random.split(key)
    x = jax.random.normal(kx, (batch, input_dim), jnp.float32)
    weights, biases = init_params(key, input_dim, hidden_dims, output_dim)
    ref = reference_forward(x, weights, biases)

    # 1) Exact f32 path, all weights VMEM-resident, single-buffered params
    #    requested (falls back transparently if unsupported).
    p_f32 = pack_params(weights, biases, compute_dtype=jnp.float32)
    out_f32 = jax.block_until_ready(
        fully_connected_network(x, p_f32, resident_single_buffer=True))
    assert out_f32.shape == (batch, output_dim)
    assert jnp.allclose(out_f32, ref, atol=1e-5, rtol=1e-5), "f32 mismatch vs reference"

    # 2) Default bf16-MXU path (f32 accumulation), bf16 writeback; params packed
    #    once and reused.
    p_bf16 = pack_params(weights, biases)
    out_bf16 = jax.block_until_ready(
        fully_connected_network(x, p_bf16, out_dtype=jnp.bfloat16))
    assert out_bf16.shape == (batch, output_dim)
    assert jnp.allclose(out_bf16.astype(jnp.float32), ref, atol=5e-2, rtol=5e-2), \
        "bf16 mismatch vs reference"

    # 3) K-tiled first-layer fallback (large-gene-count regime), forced here with
    #    a wider input so the K grid has several steps; exact f32 check.
    in_dim2 = 320
    key, kx2 = jax.random.split(key)
    x2 = jax.random.normal(kx2, (96, in_dim2), jnp.float32)
    w2, b2 = init_params(key, in_dim2, [64], output_dim)
    ref2 = reference_forward(x2, w2, b2)
    p_kt = pack_params(w2, b2, compute_dtype=jnp.float32, force_ktiled=True, tk0=128)
    out_kt = jax.block_until_ready(fully_connected_network(x2, p_kt))
    assert out_kt.shape == (96, output_dim)
    assert jnp.allclose(out_kt, ref2, atol=1e-5, rtol=1e-5), "k-tiled mismatch vs reference"

    print("KERNEL_OK")
</pallas_src>

<mosaic_0001>
module attributes {stable_mosaic.version = 11 : i64} {
  func.func @_mlp_kernel_resident(%arg0: i32, %arg1: memref<152x128xf32, #tpu.memory_space<vmem>>, %arg2: memref<128x128xf32, #tpu.memory_space<vmem>>, %arg3: memref<1x128xf32, #tpu.memory_space<vmem>>, %arg4: memref<128x128xf32, #tpu.memory_space<vmem>>, %arg5: memref<1x128xf32, #tpu.memory_space<vmem>>, %arg6: memref<128x128xf32, #tpu.memory_space<vmem>>, %arg7: memref<1x128xf32, #tpu.memory_space<vmem>>, %arg8: memref<152x128xf32, #tpu.memory_space<vmem>>) attributes {dimension_semantics = [#tpu.dimension_semantics<parallel>], iteration_bounds = array<i64: 2>, scalar_prefetch = 0 : i64, scratch_operands = 0 : i64, tpu.core_type = #tpu.core_type<tc>, window_params = [{transform_indices = @transform_0, window_bounds = array<i64: 152, 128>}, {pipeline_mode = #tpu.pipeline_mode<synchronous>, transform_indices = @transform_1, window_bounds = array<i64: 128, 128>}, {pipeline_mode = #tpu.pipeline_mode<synchronous>, transform_indices = @transform_2, window_bounds = array<i64: 1, 128>}, {pipeline_mode = #tpu.pipeline_mode<synchronous>, transform_indices = @transform_3, window_bounds = array<i64: 128, 128>}, {pipeline_mode = #tpu.pipeline_mode<synchronous>, transform_indices = @transform_4, window_bounds = array<i64: 1, 128>}, {pipeline_mode = #tpu.pipeline_mode<synchronous>, transform_indices = @transform_5, window_bounds = array<i64: 128, 128>}, {pipeline_mode = #tpu.pipeline_mode<synchronous>, transform_indices = @transform_6, window_bounds = array<i64: 1, 128>}, {transform_indices = @transform_7, window_bounds = array<i64: 152, 128>}]} {
    %c0 = arith.constant 0 : index
    %c0_0 = arith.constant 0 : index
    %0 = vector.load %arg1[%c0, %c0_0] : memref<152x128xf32, #tpu.memory_space<vmem>>, vector<152x128xf32>
    %c0_1 = arith.constant 0 : index
    %c0_2 = arith.constant 0 : index
    %1 = vector.load %arg2[%c0_1, %c0_2] : memref<128x128xf32, #tpu.memory_space<vmem>>, vector<128x128xf32>
    %c0_3 = arith.constant 0 : index
    %c0_4 = arith.constant 0 : index
    %2 = vector.load %arg3[%c0_3, %c0_4] : memref<1x128xf32, #tpu.memory_space<vmem>>, vector<1x128xf32>
    %cst = arith.constant dense<0.000000e+00> : vector<152x128xf32>
    %3 = tpu.matmul %0, %1, %cst {dimension_numbers = #tpu.dot_dimension_numbers<[1], [0], [0], [1], [0, 0, 1, 1], [], []>} : vector<152x128xf32>, vector<128x128xf32>, vector<152x128xf32> -> vector<152x128xf32>
    %4 = vector.broadcast %2 : vector<1x128xf32> to vector<152x128xf32>
    %5 = arith.addf %3, %4 : vector<152x128xf32>
    %cst_5 = arith.constant 0.000000e+00 : f32
    %6 = vector.broadcast %cst_5 : f32 to vector<152x128xf32>
    %7 = arith.maximumf %5, %6 : vector<152x128xf32>
    %c0_6 = arith.constant 0 : index
    %c0_7 = arith.constant 0 : index
    %8 = vector.load %arg4[%c0_6, %c0_7] : memref<128x128xf32, #tpu.memory_space<vmem>>, vector<128x128xf32>
    %c0_8 = arith.constant 0 : index
    %c0_9 = arith.constant 0 : index
    %9 = vector.load %arg5[%c0_8, %c0_9] : memref<1x128xf32, #tpu.memory_space<vmem>>, vector<1x128xf32>
    %cst_10 = arith.constant dense<0.000000e+00> : vector<152x128xf32>
    %10 = tpu.matmul %7, %8, %cst_10 {dimension_numbers = #tpu.dot_dimension_numbers<[1], [0], [0], [1], [0, 0, 1, 1], [], []>} : vector<152x128xf32>, vector<128x128xf32>, vector<152x128xf32> -> vector<152x128xf32>
    %11 = vector.broadcast %9 : vector<1x128xf32> to vector<152x128xf32>
    %12 = arith.addf %10, %11 : vector<152x128xf32>
    %cst_11 = arith.constant 0.000000e+00 : f32
    %13 = vector.broadcast %cst_11 : f32 to vector<152x128xf32>
    %14 = arith.maximumf %12, %13 : vector<152x128xf32>
    %c0_12 = arith.constant 0 : index
    %c0_13 = arith.constant 0 : index
    %15 = vector.load %arg6[%c0_12, %c0_13] : memref<128x128xf32, #tpu.memory_space<vmem>>, vector<128x128xf32>
    %c0_14 = arith.constant 0 : index
    %c0_15 = arith.constant 0 : index
    %16 = vector.load %arg7[%c0_14, %c0_15] : memref<1x128xf32, #tpu.memory_space<vmem>>, vector<1x128xf32>
    %cst_16 = arith.constant dense<0.000000e+00> : vector<152x128xf32>
    %17 = tpu.matmul %14, %15, %cst_16 {dimension_numbers = #tpu.dot_dimension_numbers<[1], [0], [0], [1], [0, 0, 1, 1], [], []>} : vector<152x128xf32>, vector<128x128xf32>, vector<152x128xf32> -> vector<152x128xf32>
    %18 = vector.broadcast %16 : vector<1x128xf32> to vector<152x128xf32>
    %19 = arith.addf %17, %18 : vector<152x128xf32>
    %c0_17 = arith.constant 0 : index
    %c0_18 = arith.constant 0 : index
    %20 = vector.load %arg8[%c0_17, %c0_18] : memref<152x128xf32, #tpu.memory_space<vmem>>, vector<152x128xf32>
    tpu.vector_store %arg8[%c0_17, %c0_18], %19 {strides = array<i32>} : memref<152x128xf32, #tpu.memory_space<vmem>>, vector<152x128xf32>,
    return
  }
  func.func @transform_0(%arg0: i32) -> (i32, i32) {
    %c0_i32 = arith.constant 0 : i32
    %c0_i32_0 = arith.constant 0 : i32
    return %arg0, %c0_i32 : i32, i32
  }
  func.func @transform_1(%arg0: i32) -> (i32, i32) {
    %c0_i32 = arith.constant 0 : i32
    %c0_i32_0 = arith.constant 0 : i32
    %c0_i32_1 = arith.constant 0 : i32
    return %c0_i32, %c0_i32_0 : i32, i32
  }
  func.func @transform_2(%arg0: i32) -> (i32, i32) {
    %c0_i32 = arith.constant 0 : i32
    %c0_i32_0 = arith.constant 0 : i32
    %c0_i32_1 = arith.constant 0 : i32
    return %c0_i32, %c0_i32_0 : i32, i32
  }
  func.func @transform_3(%arg0: i32) -> (i32, i32) {
    %c0_i32 = arith.constant 0 : i32
    %c0_i32_0 = arith.constant 0 : i32
    %c0_i32_1 = arith.constant 0 : i32
    return %c0_i32, %c0_i32_0 : i32, i32
  }
  func.func @transform_4(%arg0: i32) -> (i32, i32) {
    %c0_i32 = arith.constant 0 : i32
    %c0_i32_0 = arith.constant 0 : i32
    %c0_i32_1 = arith.constant 0 : i32
    return %c0_i32, %c0_i32_0 : i32, i32
  }
  func.func @transform_5(%arg0: i32) -> (i32, i32) {
    %c0_i32 = arith.constant 0 : i32
    %c0_i32_0 = arith.constant 0 : i32
    %c0_i32_1 = arith.constant 0 : i32
    return %c0_i32, %c0_i32_0 : i32, i32
  }
  func.func @transform_6(%arg0: i32) -> (i32, i32) {
    %c0_i32 = arith.constant 0 : i32
    %c0_i32_0 = arith.constant 0 : i32
    %c0_i32_1 = arith.constant 0 : i32
    return %c0_i32, %c0_i32_0 : i32, i32
  }
  func.func @transform_7(%arg0: i32) -> (i32, i32) {
    %c0_i32 = arith.constant 0 : i32
    %c0_i32_0 = arith.constant 0 : i32
    return %arg0, %c0_i32 : i32, i32
  }
}

module attributes {stable_mosaic.version = 11 : i64} {
  func.func @_mlp_kernel_resident(%arg0: i32, %arg1: memref<152x128xf32, #tpu.memory_space<vmem>>, %arg2: memref<128x128xf32, #tpu.memory_space<vmem>>, %arg3: memref<1x128xf32, #tpu.memory_space<vmem>>, %arg4: memref<128x128xf32, #tpu.memory_space<vmem>>, %arg5: memref<1x128xf32, #tpu.memory_space<vmem>>, %arg6: memref<128x128xf32, #tpu.memory_space<vmem>>, %arg7: memref<1x128xf32, #tpu.memory_space<vmem>>, %arg8: memref<152x128xf32, #tpu.memory_space<vmem>>) attributes {dimension_semantics = [#tpu.dimension_semantics<parallel>], iteration_bounds = array<i64: 2>, scalar_prefetch = 0 : i64, scratch_operands = 0 : i64, tpu.core_type = #tpu.core_type<tc>, window_params = [{transform_indices = @transform_0, window_bounds = array<i64: 152, 128>}, {pipeline_mode = #tpu.pipeline_mode<synchronous>, transform_indices = @transform_1, window_bounds = array<i64: 128, 128>}, {pipeline_mode = #tpu.pipeline_mode<synchronous>, transform_indices = @transform_2, window_bounds = array<i64: 1, 128>}, {pipeline_mode = #tpu.pipeline_mode<synchronous>, transform_indices = @transform_3, window_bounds = array<i64: 128, 128>}, {pipeline_mode = #tpu.pipeline_mode<synchronous>, transform_indices = @transform_4, window_bounds = array<i64: 1, 128>}, {pipeline_mode = #tpu.pipeline_mode<synchronous>, transform_indices = @transform_5, window_bounds = array<i64: 128, 128>}, {pipeline_mode = #tpu.pipeline_mode<synchronous>, transform_indices = @transform_6, window_bounds = array<i64: 1, 128>}, {transform_indices = @transform_7, window_bounds = array<i64: 152, 128>}]} {
    %c0 = arith.constant 0 : index
    %c0_0 = arith.constant 0 : index
    %0 = vector.load %arg1[%c0, %c0_0] : memref<152x128xf32, #tpu.memory_space<vmem>>, vector<152x128xf32>
    %c0_1 = arith.constant 0 : index
    %c0_2 = arith.constant 0 : index
    %1 = vector.load %arg2[%c0_1, %c0_2] : memref<128x128xf32, #tpu.memory_space<vmem>>, vector<128x128xf32>
    %c0_3 = arith.constant 0 : index
    %c0_4 = arith.constant 0 : index
    %2 = vector.load %arg3[%c0_3, %c0_4] : memref<1x128xf32, #tpu.memory_space<vmem>>, vector<1x128xf32>
    %cst = arith.constant dense<0.000000e+00> : vector<152x128xf32>
    %3 = tpu.matmul %0, %1, %cst {dimension_numbers = #tpu.dot_dimension_numbers<[1], [0], [0], [1], [0, 0, 1, 1], [], []>} : vector<152x128xf32>, vector<128x128xf32>, vector<152x128xf32> -> vector<152x128xf32>
    %4 = vector.broadcast %2 : vector<1x128xf32> to vector<152x128xf32>
    %5 = arith.addf %3, %4 : vector<152x128xf32>
    %cst_5 = arith.constant 0.000000e+00 : f32
    %6 = vector.broadcast %cst_5 : f32 to vector<152x128xf32>
    %7 = arith.maximumf %5, %6 : vector<152x128xf32>
    %c0_6 = arith.constant 0 : index
    %c0_7 = arith.constant 0 : index
    %8 = vector.load %arg4[%c0_6, %c0_7] : memref<128x128xf32, #tpu.memory_space<vmem>>, vector<128x128xf32>
    %c0_8 = arith.constant 0 : index
    %c0_9 = arith.constant 0 : index
    %9 = vector.load %arg5[%c0_8, %c0_9] : memref<1x128xf32, #tpu.memory_space<vmem>>, vector<1x128xf32>
    %cst_10 = arith.constant dense<0.000000e+00> : vector<152x128xf32>
    %10 = tpu.matmul %7, %8, %cst_10 {dimension_numbers = #tpu.dot_dimension_numbers<[1], [0], [0], [1], [0, 0, 1, 1], [], []>} : vector<152x128xf32>, vector<128x128xf32>, vector<152x128xf32> -> vector<152x128xf32>
    %11 = vector.broadcast %9 : vector<1x128xf32> to vector<152x128xf32>
    %12 = arith.addf %10, %11 : vector<152x128xf32>
    %cst_11 = arith.constant 0.000000e+00 : f32
    %13 = vector.broadcast %cst_11 : f32 to vector<152x128xf32>
    %14 = arith.maximumf %12, %13 : vector<152x128xf32>
    %c0_12 = arith.constant 0 : index
    %c0_13 = arith.constant 0 : index
    %15 = vector.load %arg6[%c0_12, %c0_13] : memref<128x128xf32, #tpu.memory_space<vmem>>, vector<128x128xf32>
    %c0_14 = arith.constant 0 : index
    %c0_15 = arith.constant 0 : index
    %16 = vector.load %arg7[%c0_14, %c0_15] : memref<1x128xf32, #tpu.memory_space<vmem>>, vector<1x128xf32>
    %cst_16 = arith.constant dense<0.000000e+00> : vector<152x128xf32>
    %17 = tpu.matmul %14, %15, %cst_16 {dimension_numbers = #tpu.dot_dimension_numbers<[1], [0], [0], [1], [0, 0, 1, 1], [], []>} : vector<152x128xf32>, vector<128x128xf32>, vector<152x128xf32> -> vector<152x128xf32>
    %18 = vector.broadcast %16 : vector<1x128xf32> to vector<152x128xf32>
    %19 = arith.addf %17, %18 : vector<152x128xf32>
    %c0_17 = arith.constant 0 : index
    %c0_18 = arith.constant 0 : index
    %20 = vector.load %arg8[%c0_17, %c0_18] : memref<152x128xf32, #tpu.memory_space<vmem>>, vector<152x128xf32>
    tpu.vector_store %arg8[%c0_17, %c0_18], %19 {strides = array<i32>} : memref<152x128xf32, #tpu.memory_space<vmem>>, vector<152x128xf32>,
    return
  }
  func.func @transform_0(%arg0: i32) -> (i32, i32) {
    %c0_i32 = arith.constant 0 : i32
    %c0_i32_0 = arith.constant 0 : i32
    return %arg0, %c0_i32 : i32, i32
  }
  func.func @transform_1(%arg0: i32) -> (i32, i32) {
    %c0_i32 = arith.constant 0 : i32
    %c0_i32_0 = arith.constant 0 : i32
    %c0_i32_1 = arith.constant 0 : i32
    return %c0_i32, %c0_i32_0 : i32, i32
  }
  func.func @transform_2(%arg0: i32) -> (i32, i32) {
    %c0_i32 = arith.constant 0 : i32
    %c0_i32_0 = arith.constant 0 : i32
    %c0_i32_1 = arith.constant 0 : i32
    return %c0_i32, %c0_i32_0 : i32, i32
  }
  func.func @transform_3(%arg0: i32) -> (i32, i32) {
    %c0_i32 = arith.constant 0 : i32
    %c0_i32_0 = arith.constant 0 : i32
    %c0_i32_1 = arith.constant 0 : i32
    return %c0_i32, %c0_i32_0 : i32, i32
  }
  func.func @transform_4(%arg0: i32) -> (i32, i32) {
    %c0_i32 = arith.constant 0 : i32
    %c0_i32_0 = arith.constant 0 : i32
    %c0_i32_1 = arith.constant 0 : i32
    return %c0_i32, %c0_i32_0 : i32, i32
  }
  func.func @transform_5(%arg0: i32) -> (i32, i32) {
    %c0_i32 = arith.constant 0 : i32
    %c0_i32_0 = arith.constant 0 : i32
    %c0_i32_1 = arith.constant 0 : i32
    return %c0_i32, %c0_i32_0 : i32, i32
  }
  func.func @transform_6(%arg0: i32) -> (i32, i32) {
    %c0_i32 = arith.constant 0 : i32
    %c0_i32_0 = arith.constant 0 : i32
    %c0_i32_1 = arith.constant 0 : i32
    return %c0_i32, %c0_i32_0 : i32, i32
  }
  func.func @transform_7(%arg0: i32) -> (i32, i32) {
    %c0_i32 = arith.constant 0 : i32
    %c0_i32_0 = arith.constant 0 : i32
    return %arg0, %c0_i32 : i32, i32
  }
}

</mosaic_0001>

<bundles_post_ra>
// kernel: tpu_custom_call.1
= control target key start
LH: loop header
LB: loop body
LE: loop exit
PB: predicated region body
PF: predicated region fallthrough
CT: control target
= control target key end

     0   :  { %12 = vsyncpa [#allocation3], 0  ;;  %s2442_s0 = inlined_call_operand.hbm [shape: f32[304,128], index: 0, kind: input, shape index: {}]   ;;  %s2443_s1 = inlined_call_operand.hbm [shape: f32[128,128], index: 1, kind: input, shape index: {}]   ;;  %s2444_s2 = inlined_call_operand.vmem [shape: f32[1,128], index: 2, kind: input, shape index: {}]   ;;  %s2445_s3 = inlined_call_operand.hbm [shape: f32[128,128], index: 3, kind: input, shape index: {}]   ;;  %s2446_s4 = inlined_call_operand.vmem [shape: f32[1,128], index: 4, kind: input, shape index: {}]   ;;  %s2447_s5 = inlined_call_operand.hbm [shape: f32[128,128], index: 5, kind: input, shape index: {}]   ;;  %s2448_s6 = inlined_call_operand.vmem [shape: f32[1,128], index: 6, kind: input, shape index: {}]   ;;  %s2449_s7 = inlined_call_operand.hbm [shape: f32[304,128], index: 7, kind: output, shape index: {}]  }
   0x1   :  { %14 = vsyncpa [#allocation3 + $0x1], 0 }
   0x2   :  { %15 = vsyncpa [#allocation6], 0 }
   0x3   :  { %16 = vsyncpa [#allocation9], 0 }
   0x4   :  { %17 = vsyncpa [#allocation4], 0 }
   0x5   :  { %19 = vsyncpa [#allocation4 + $0x1], 0  ;;  %s1891_s24 = smov 0   ;;  %s1893_s25 = smov 0  }
   0x6   :  { %s1895_s26 = smov 0   ;;  %s1897_s27 = smov 0  }
   0x7 LB: > { %s1912_s28 = sadd.s32 4294967295, %s1837_s27   ;;  %s1084_s29 = sadd.s32 4294967294, %s1837_s27   ;;  %s1837_s27 = sphi %s1897_s27, %s2479_s27   ;;  %s1833_s26 = sphi %s1895_s26, %s2478_s26   ;;  %s1829_s25 = sphi %s1893_s25, %s2477_s25   ;;  %s1825_s24 = sphi %s1891_s24, %s2476_s24  }
   0x8   : > { %p45_p0 = scmp.ne.s32.totalorder %s1829_s25, %s1825_s24  ;;  %p2450_p1 = scmp.eq.s32.totalorder %s1912_s28, 0 }
   0x9   : > { %p201_p3 = scmp.eq.s32.totalorder %s1084_s29, 1  ;;  %p1085_p5 = scmp.ge.s32.totalorder %s1837_s27, 1 }
   0xa   : > { %p1921_p4 = por %p2450_p1, %p45_p0  ;;  %p208_p7 = scmp.lt.s32.totalorder %s1837_s27, 3 }
   0xb   : > { %p1926_p6 = por %p201_p3, %p45_p0  ;;  %s1839_s10 = smov [#allocation5]  }
   0xc   : > { %s2456_s30 = scalar_select %p1921_p4, 1, 0 }
   0xd   : > { %s2457_s8 = scalar_select %p1926_p6, 1, 0 }
   0xe   : > { %p1931_p8 = pnand %p1085_p5, %p208_p7  ;;  %s220_s11 = sshll.u32 %s1839_s10, 4  ;;  %s1935_s11 = int_to_ptr.vmem [resolvable:$true] %s220_s11 }
   0xf   : > { %2458 = sst [smem:[#allocation15_spill]] %s2457_s8  ;;  %s1840_s13 = smov [#allocation7]  }
  0x10   : > { %s2459_s9 = scalar_select %p1931_p8, 1, 0 }
  0x11   : > { %p1581_p9 = pneg %p1931_p8  ;;  %s236_s14 = sshll.u32 %s1840_s13, 4  ;;  %s1946_s14 = int_to_ptr.vmem [resolvable:$true] %s236_s14 }
  0x12   : > { %s1841_s15 = smov [#allocation8]   ;;  %s1649_s19 = scalar_lea.hbm %s2443_s1, 2048 }
  0x13   : > { %p1942_p11 = pnand %p1581_p9, %p2450_p1  ;;  %s1948_s16 = sshll.u32 %s1841_s15, 4  ;;  %s253_s16 = int_to_ptr.vmem [resolvable:$true] %s1948_s16 }
  0x14   : > { %p1650_p12 = scmp.ne.s32.totalorder %s2443_s1, %s1649_s19  ;;  %p1656_p5 = scmp.lt.u32.totalorder %s1649_s19, %s2443_s1 }
  0x15   : > { %p1958_p13 = pneg %p1942_p11 }
  0x17   : > { %p1652_p0 = pnand %p1958_p13, %p1650_p12 }
  0x19   : > { %p1653_p3 = pneg %p1652_p0 }
  0x1b   : > { %p1658_p7 = pnand %p1656_p5, %p1653_p3 }
  0x1d   : > { %1661 = shalt.err (!%p1658_p7)
}
  0x1e   : > { %s1662_s10 = scalar_lea.vmem %s1935_s11, 2048  ;;  %p1670_p2 = scmp.lt.s32.totalorder %s1935_s11, %s1935_s11 }
  0x1f   : > { %p1663_p9 = scmp.ne.s32.totalorder %s1935_s11, %s1662_s10  ;;  %p1671_p6 = scmp.lt.s32.totalorder %s1662_s10, %s1662_s10 }
  0x21   : > { %p1665_p10 = pnand %p1663_p9, %p1958_p13  ;;  %p1672_p12 = por %p1671_p6, %p1670_p2 }
  0x23   : > { %p1666_p1 = pneg %p1665_p10 }
  0x25   : > { %p1673_p0 = pnand %p1672_p12, %p1666_p1 }
  0x27   : > { %1676 = shalt.err (!%p1673_p0)
}
  0x28   : > { %s2454_s13 = smov 128   ;;  %s2455_s15 = smov 8  }
  0x29   : > { %1584 = dma.hbm_to_vmem [thread:$0]  (!%p1942_p11), %s2443_s1, 2048, %s1935_s11, [#allocation6], %s2454_s13, %s2454_s13, %s2455_s15  }
  0x2a   : > { %s1677_s21 = scalar_lea.hbm %s2445_s3, 2048 }
  0x2b   : > { %p1678_p1 = scmp.ne.s32.totalorder %s2445_s3, %s1677_s21  ;;  %p1684_p10 = scmp.lt.u32.totalorder %s1677_s21, %s2445_s3 }
  0x2d   : > { %p1680_p2 = pnand %p1678_p1, %p1958_p13 }
  0x2f   : > { %p1681_p6 = pneg %p1680_p2 }
  0x31   : > { %p1686_p3 = pnand %p1684_p10, %p1681_p6 }
  0x33   : > { %1689 = shalt.err (!%p1686_p3)
}
  0x34   : > { %s1690_s11 = scalar_lea.vmem %s1946_s14, 2048  ;;  %p1698_p12 = scmp.lt.s32.totalorder %s1946_s14, %s1946_s14 }
  0x35   : > { %p1691_p5 = scmp.ne.s32.totalorder %s1946_s14, %s1690_s11  ;;  %p1699_p0 = scmp.lt.s32.totalorder %s1690_s11, %s1690_s11 }
  0x37   : > { %p1693_p7 = pnand %p1691_p5, %p1958_p13  ;;  %p1700_p1 = por %p1699_p0, %p1698_p12 }
  0x39   : > { %p1694_p9 = pneg %p1693_p7 }
  0x3b   : > { %p1701_p2 = pnand %p1700_p1, %p1694_p9 }
  0x3d   : > { %1704 = shalt.err (!%p1701_p2)
}
  0x3e   : > { %1587 = dma.hbm_to_vmem [thread:$0]  (!%p1942_p11), %s2445_s3, 2048, %s1946_s14, [#allocation6], %s2454_s13, %s2454_s13, %s2455_s15  }
  0x3f   : > { %s1705_s20 = scalar_lea.hbm %s2447_s5, 2048 }
  0x40   : > { %p1706_p6 = scmp.ne.s32.totalorder %s2447_s5, %s1705_s20  ;;  %p1712_p5 = scmp.lt.u32.totalorder %s1705_s20, %s2447_s5 }
  0x42   : > { %p1708_p10 = pnand %p1706_p6, %p1958_p13 }
  0x44   : > { %p1709_p3 = pneg %p1708_p10 }
  0x46   : > { %p1714_p7 = pnand %p1712_p5, %p1709_p3 }
  0x48   : > { %1717 = shalt.err (!%p1714_p7)
}
  0x49   : > { %s1718_s11 = scalar_lea.vmem %s253_s16, 2048  ;;  %p1726_p1 = scmp.lt.s32.totalorder %s253_s16, %s253_s16 }
  0x4a   : > { %p1719_p9 = scmp.ne.s32.totalorder %s253_s16, %s1718_s11  ;;  %p1727_p2 = scmp.lt.s32.totalorder %s1718_s11, %s1718_s11 }
  0x4c   : > { %p1721_p12 = pnand %p1719_p9, %p1958_p13  ;;  %p1728_p4 = por %p1727_p2, %p1726_p1 }
  0x4e   : > { %p1722_p0 = pneg %p1721_p12 }
  0x50   : > { %p1729_p8 = pnand %p1728_p4, %p1722_p0 }
  0x52   : > { %1732 = shalt.err (!%p1729_p8)
}
  0x53   : > { %1590 = dma.hbm_to_vmem [thread:$0]  (!%p1942_p11), %s2447_s5, 2048, %s253_s16, [#allocation9], %s2454_s13, %s2454_s13, %s2455_s15  }
  0x54   : > { %s2031_s22 = sadd.s32 1, %s1837_s27   ;;  %s32_s17 = sadd.s32 1, %s1833_s26 }
  0x55   : > { %s29_s12 = ssub.s32 %s1837_s27, %s2031_s22  ;;  %p39_p8 = scmp.ne.s32.totalorder %s1833_s26, %s1829_s25 }
  0x56   : > { %p30_p4 = scmp.eq.s32.totalorder %s29_s12, 0  ;;  %p40_p13 = scmp.eq.s32.totalorder %s1837_s27, 0 }
  0x57   : > { %p1602_p6 = scmp.lt.s32.totalorder %s1837_s27, 2  ;;  %p2462_p3 = scmp.eq.s32.totalorder %s1912_s28, 1 }
  0x58   : > { %s2041_s18 = scalar_select %p30_p4, %s1833_s26, %s32_s17  }
  0x59   : > { %p41_p10 = por %p40_p13, %p39_p8  ;;  %p2045_p5 = por %p2462_p3, %p39_p8 }
  0x5a   : > { %s269_s20 = sand.u32 1, %s1833_s26   ;;  %s1101_s21 = smul.u32 2432, %s1837_s27 }
  0x5b   : > { %s1563_s16 = smul.u32 152, %s269_s20  ;;  %p2051_p11 = pnand %p1602_p6, %p41_p10 }
  0x5c   : > { %s2058_s11 = scalar_lea.hbm %s2442_s0, %s1101_s21  ;;  %s2062_s12 = scalar_lea.sflag [#allocation3], %s269_s20 }
  0x5d   : > { %s273_s14 = scalar_lea.vmem [#allocation2], %s1563_s16  ;;  %s1733_s17 = scalar_lea.hbm %s2058_s11, 2432 }
  0x5e   : > { %s280_s8 = sshll.u32 %s273_s14, 4  ;;  %p1734_p7 = scmp.ne.s32.totalorder %s2058_s11, %s1733_s17  ;;  %s2060_s8 = int_to_ptr.vmem [resolvable:$true] %s280_s8 }
  0x5f   : > { %p1735_p9 = pneg %p2051_p11  ;;  %s1738_s10 = scalar_lea.hbm %s2442_s0, 4864 }
  0x60   : > { %p1739_p1 = scmp.lt.u32.totalorder %s2058_s11, %s2442_s0  ;;  %p1740_p2 = scmp.lt.u32.totalorder %s1738_s10, %s1733_s17 }
  0x61   : > { %p1736_p12 = pnand %p1735_p9, %p1734_p7  ;;  %p1742_p8 = scmp.lt.u32.totalorder %s1733_s17, %s2058_s11 }
  0x62   : > { %p1741_p4 = por %p1740_p2, %p1739_p1 }
  0x63   : > { %p1737_p0 = pneg %p1736_p12 }
  0x64   : > { %p1743_p13 = por %p1742_p8, %p1741_p4 }
  0x66   : > { %p1744_p6 = pnand %p1743_p13, %p1737_p0 }
  0x68   : > { %1747 = shalt.err (!%p1744_p6)
}
  0x69   : > { %s1748_s20 = scalar_lea.vmem %s2060_s8, 2432  ;;  %s1844_s16 = smov [#allocation2]  }
  0x6a   : > { %p1749_p10 = scmp.ne.s32.totalorder %s2060_s8, %s1748_s20  ;;  %s1753_s14 = sshll.u32 %s1844_s16, 4  ;;  %s1754_s14 = int_to_ptr.vmem [resolvable:$false] %s1753_s14 }
  0x6b   : > { %s1755_s13 = scalar_lea.vmem %s1754_s14, 4864  ;;  %p1756_p12 = scmp.lt.s32.totalorder %s2060_s8, %s1754_s14 }
  0x6c   : > { %p1751_p3 = pnand %p1749_p10, %p1735_p9  ;;  %p1757_p1 = scmp.lt.s32.totalorder %s1755_s13, %s1748_s20 }
  0x6e   : > { %p1752_p7 = pneg %p1751_p3  ;;  %p1758_p2 = por %p1757_p1, %p1756_p12 }
  0x70   : > { %p1759_p4 = pnand %p1758_p2, %p1752_p7 }
  0x72   : > { %1762 = shalt.err (!%p1759_p4)
}
  0x73   : > { %s2465_s15 = smov 8   ;;  %s2466_s17 = smov 128  }
  0x74   : > { %1594 = dma.hbm_to_vmem [thread:$0]  (!%p2051_p11), %s2058_s11, 2432, %s2060_s8, %s2062_s12, %s2466_s17, %s2466_s17, %s2465_s15  }
  0x75   : > { %p2467_p9 = scmp.ne.s32.totalorder %s2459_s9, 0 }
  0x76   : > { %s2096_s21 = sand.u32 (!%p2467_p9), 1, %s1829_s25   ;;  %p2468_p0 = scmp.ne.s32.totalorder (!%p2467_p9), %s2456_s30, 0 }
  0x77   : > { %292 = sbr.rel (%p2467_p9) target bundleno = 902 (0x386), region = 48  ;;  %s295_s10 = scalar_lea.sflag (!%p2467_p9), [#allocation3], %s2096_s21 }
  0x78   : > { %s1564_s29 = smul.u32 (!%p2467_p9), 152, %s2096_s21 }
  0x7a   : > { %s2102_s23 = scalar_lea.vmem (!%p2467_p9), [#allocation2], %s1564_s29 }
  0x7e   : > { %1808 = dma.done.wait (%p2468_p0), %s295_s10, 2432  }
  0x7f   : > { %1810 = vsyncadd (%p2468_p0), %s295_s10, 4294964864  ;;  %p2469_p11 = scmp.eq.s32.totalorder %s1912_s28, 0 }
  0x81   : > { %1812 = dma.done.wait (%p2469_p11), [#allocation6], 4096   ;;  %p2470_p8 = pmov %p2469_p11 }
  0x83   : > { %1814 = vsyncadd (%p2470_p8), [#allocation6], 4294963200  ;;  %p2471_p13 = pmov %p2470_p8 }
  0x84   : > { %p2472_p6 = pmov %p2470_p8 }
  0x85   : > { %1816 = dma.done.wait (%p2471_p13), [#allocation9], 2048  }
  0x86   : > { %1818 = vsyncadd (%p2472_p6), [#allocation9], 4294965248  ;;  %v1845_v0 = vmov 0.0|0.0   ;;  %vm1846_vm0 = vmmov 0   ;;  %v1847_v1 = vmov 0.0   ;;  %v362_v2 = vld [vmem:[#allocation5] sm:$0xff] }
  0x87   : > { %1475 = vmatprep.subr.bf16.mxu0 %v1845_v0  ;;  %1240 = vmatprep.mubr.msk.f32.mxu0 %vm1846_vm0, %v1847_v1  ;;  %v363_v3 = vld [vmem:[#allocation5 + $0x8] sm:$0xff]  ;;  %v364_v4 = vld [vmem:[#allocation5 + $0x10] sm:$0xff]  ;;  %v365_v6 = vld [vmem:[#allocation5 + $0x18] sm:$0xff]  ;;  %s2352_s16 = scalar_lea.vmem [#allocation10], %s1564_s29  ;;  %s1102_s14 = smul.u32 2432, %s1912_s28 }
  0x88   : > { %1547 = vmatprep.subr.bf16.mxu1 %v1845_v0  ;;  %1270 = vmatprep.mubr.msk.f32.mxu1 %vm1846_vm0, %v1847_v1  ;;  %v1476_v5 = vpack.c.bf16 %v363_v3, %v362_v2  ;;  %v1479_v7 = vpack.c.bf16 %v365_v6, %v364_v4  ;;  %v366_v8 = vld [vmem:[#allocation5 + $0x20] sm:$0xff]  ;;  %v367_v9 = vld [vmem:[#allocation5 + $0x28] sm:$0xff]  ;;  %v368_v11 = vld [vmem:[#allocation5 + $0x30] sm:$0xff]  ;;  %s982_s13 = sshll.u32 %s2352_s16, 4  ;;  %s969_s28 = scalar_lea.sflag [#allocation4], %s2096_s21  ;;  %s2396_s13 = int_to_ptr.vmem [resolvable:$true] %s982_s13 }
  0x89   : > { %v1482_v10 = vpack.c.bf16 %v367_v9, %v366_v8  ;;  %v369_v12 = vld [vmem:[#allocation5 + $0x38] sm:$0xff]  ;;  %v370_v14 = vld [vmem:[#allocation5 + $0x40] sm:$0xff]  ;;  %v371_v15 = vld [vmem:[#allocation5 + $0x48] sm:$0xff]  ;;  %s2394_s29 = scalar_lea.hbm %s2449_s7, %s1102_s14  ;;  %s1763_s10 = scalar_lea.vmem %s2396_s13, 2432 }
  0x8a   : > { %1477 = vmatpush3.bf16.msra.mxu0 %v1476_v5  ;;  %1555 = vmatpush3.bf16.msra.mxu1 %v1476_v5  ;;  %v1485_v13 = vpack.c.bf16 %v369_v12, %v368_v11  ;;  %v1488_v16 = vpack.c.bf16 %v371_v15, %v370_v14  ;;  %v372_v17 = vld [vmem:[#allocation5 + $0x50] sm:$0xff]  ;;  %v373_v18 = vld [vmem:[#allocation5 + $0x58] sm:$0xff]  ;;  %v374_v20 = vld [vmem:[#allocation5 + $0x60] sm:$0xff]  ;;  %p1764_p10 = scmp.ne.s32.totalorder %s2396_s13, %s1763_s10 }
  0x8b   : > { %1478 = vmatprep.subr.bf16.mxu0 %v1845_v0  ;;  %1548 = vmatprep.subr.bf16.mxu1 %v1845_v0  ;;  %v1491_v19 = vpack.c.bf16 %v373_v18, %v372_v17  ;;  %v375_v21 = vld [vmem:[#allocation5 + $0x68] sm:$0xff]  ;;  %v376_v23 = vld [vmem:[#allocation5 + $0x70] sm:$0xff]  ;;  %v377_v24 = vld [vmem:[#allocation5 + $0x78] sm:$0xff] }
  0x8c   : > { %v1494_v22 = vpack.c.bf16 %v375_v21, %v374_v20  ;;  %v1497_v25 = vpack.c.bf16 %v377_v24, %v376_v23  ;;  %v564_v26 = vld [vmem:[#allocation7] sm:$0xff]  ;;  %v565_v27 = vld [vmem:[#allocation7 + $0x8] sm:$0xff]  ;;  %v566_v31 = vld [vmem:[#allocation7 + $0x10] sm:$0xff]  ;;  %p1765_p3 = pnand %p1764_p10, %p2045_p5 }
  0x8d   : > { %v343_v28 = vld [vmem:[%s2102_s23] sm:$0xff]  ;;  %v353_v29 = vld [vmem:[%s2102_s23 + $0x50] sm:$0xff]  ;;  %v1500_v30 = vpack.c.bf16 %v565_v27, %v564_v26  ;;  %v344_v33 = vld [vmem:[%s2102_s23 + $0x8] sm:$0xff] }
  0x8e   : > { %1480 = vmatpush3.bf16.msra.mxu0 %v1479_v7  ;;  %1556 = vmatpush3.bf16.msra.mxu1 %v1479_v7  ;;  %v567_v32 = vld [vmem:[#allocation7 + $0x18] sm:$0xff]  ;;  %v354_v34 = vld [vmem:[%s2102_s23 + $0x58] sm:$0xff]  ;;  %v355_v39 = vld [vmem:[%s2102_s23 + $0x60] sm:$0xff]  ;;  %p1766_p7 = pneg %p1765_p3 }
  0x8f   : > { %1481 = vmatprep.subr.bf16.mxu0 %v1845_v0  ;;  %1549 = vmatprep.subr.bf16.mxu1 %v1845_v0  ;;  %v1503_v35 = vpack.c.bf16 %v567_v32, %v566_v31  ;;  %v568_v36 = vld [vmem:[#allocation7 + $0x20] sm:$0xff]  ;;  %v569_v37 = vld [vmem:[#allocation7 + $0x28] sm:$0xff]  ;;  %v570_v41 = vld [vmem:[#allocation7 + $0x30] sm:$0xff] }
  0x90   : > { %v345_v38 = vld [vmem:[%s2102_s23 + $0x10] sm:$0xff]  ;;  %v1506_v40 = vpack.c.bf16 %v569_v37, %v568_v36  ;;  %v346_v43 = vld [vmem:[%s2102_s23 + $0x18] sm:$0xff]  ;;  %v356_v44 = vld [vmem:[%s2102_s23 + $0x68] sm:$0xff] }
  0x91   : > { %v571_v42 = vld [vmem:[#allocation7 + $0x38] sm:$0xff]  ;;  %v572_v46 = vld [vmem:[#allocation7 + $0x40] sm:$0xff]  ;;  %v573_v47 = vld [vmem:[#allocation7 + $0x48] sm:$0xff] }
  0x92   : > { %1483 = vmatpush3.bf16.msra.mxu0 %v1482_v10  ;;  %1557 = vmatpush3.bf16.msra.mxu1 %v1482_v10  ;;  %v1509_v45 = vpack.c.bf16 %v571_v42, %v570_v41  ;;  %v347_v48 = vld [vmem:[%s2102_s23 + $0x20] sm:$0xff]  ;;  %v357_v49 = vld [vmem:[%s2102_s23 + $0x70] sm:$0xff]  ;;  %v1512_v50 = vpack.c.bf16 %v573_v47, %v572_v46  ;;  %v348_v53 = vld [vmem:[%s2102_s23 + $0x28] sm:$0xff] }
  0x93   : > { %1484 = vmatprep.subr.bf16.mxu0 %v1845_v0  ;;  %1550 = vmatprep.subr.bf16.mxu1 %v1845_v0  ;;  %v574_v51 = vld [vmem:[#allocation7 + $0x50] sm:$0xff]  ;;  %v575_v52 = vld [vmem:[#allocation7 + $0x58] sm:$0xff]  ;;  %v358_v54 = vld [vmem:[%s2102_s23 + $0x78] sm:$0xff] }
  0x94   : > { %v1515_v55 = vpack.c.bf16 %v575_v52, %v574_v51  ;;  %v576_v56 = vld [vmem:[#allocation7 + $0x60] sm:$0xff]  ;;  %v577_v57 = vld [vmem:[#allocation7 + $0x68] sm:$0xff]  ;;  %v360_v62 = vld [vmem:[%s2102_s23 + $0x88] sm:$0xff] }
  0x95   : > { %v349_v58 = vld [vmem:[%s2102_s23 + $0x30] sm:$0xff]  ;;  %v359_v59 = vld [vmem:[%s2102_s23 + $0x80] sm:$0xff]  ;;  %v1518_v60 = vpack.c.bf16 %v577_v57, %v576_v56  ;;  %v350_v61 = vld [vmem:[%s2102_s23 + $0x38] sm:$0xff] }
  0x96   : > { %1486 = vmatpush3.bf16.msra.mxu0 %v1485_v13  ;;  %1558 = vmatpush3.bf16.msra.mxu1 %v1485_v13  ;;  %v351_v63 = vld [vmem:[%s2102_s23 + $0x40] sm:$0xff]  ;;  %v361_v2 = vld [vmem:[%s2102_s23 + $0x90] sm:$0xff]  ;;  %v352_v3 = vld [vmem:[%s2102_s23 + $0x48] sm:$0xff]  ;;  %s1848_s23 = smov [#allocation10]  }
  0x97   : > { %1487 = vmatprep.subr.bf16.mxu0 %v1845_v0  ;;  %1551 = vmatprep.subr.bf16.mxu1 %v1845_v0  ;;  %v578_v4 = vld [vmem:[#allocation7 + $0x70] sm:$0xff]  ;;  %v579_v5 = vld [vmem:[#allocation7 + $0x78] sm:$0xff]  ;;  %v766_v7 = vld [vmem:[#allocation8] sm:$0xff]  ;;  %s1767_s30 = sshll.u32 %s1848_s23, 4  ;;  %s1768_s30 = int_to_ptr.vmem [resolvable:$false] %s1767_s30 }
  0x98   : > { %v1521_v6 = vpack.c.bf16 %v579_v5, %v578_v4  ;;  %v767_v8 = vld [vmem:[#allocation8 + $0x8] sm:$0xff]  ;;  %v768_v9 = vld [vmem:[#allocation8 + $0x10] sm:$0xff]  ;;  %v769_v11 = vld [vmem:[#allocation8 + $0x18] sm:$0xff]  ;;  %s1769_s9 = scalar_lea.vmem %s1768_s30, 4864  ;;  %p1770_p12 = scmp.lt.s32.totalorder %s2396_s13, %s1768_s30 }
  0x99   : > { %v1524_v10 = vpack.c.bf16 %v767_v8, %v766_v7  ;;  %v1527_v12 = vpack.c.bf16 %v769_v11, %v768_v9  ;;  %v770_v13 = vld [vmem:[#allocation8 + $0x20] sm:$0xff]  ;;  %v771_v14 = vld [vmem:[#allocation8 + $0x28] sm:$0xff]  ;;  %v773_v17 = vld [vmem:[#allocation8 + $0x38] sm:$0xff]  ;;  %p1771_p1 = scmp.lt.s32.totalorder %s1769_s9, %s1763_s10 }
  0x9a   : > { %1489 = vmatpush3.bf16.msra.mxu0 %v1488_v16  ;;  %1559 = vmatpush3.bf16.msra.mxu1 %v1488_v16  ;;  %v1530_v15 = vpack.c.bf16 %v771_v14, %v770_v13  ;;  %v772_v16 = vld [vmem:[#allocation8 + $0x30] sm:$0xff]  ;;  %v775_v20 = vld [vmem:[#allocation8 + $0x48] sm:$0xff]  ;;  %v777_v23 = vld [vmem:[#allocation8 + $0x58] sm:$0xff] }
  0x9b   : > { %1490 = vmatprep.subr.bf16.mxu0 %v1845_v0  ;;  %1552 = vmatprep.subr.bf16.mxu1 %v1845_v0  ;;  %v1533_v18 = vpack.c.bf16 %v773_v17, %v772_v16  ;;  %v779_v26 = vld [vmem:[#allocation8 + $0x68] sm:$0xff]  ;;  %p1772_p2 = por %p1771_p1, %p1770_p12 }
  0x9d   : > { %p1773_p4 = pnand %p1772_p2, %p1766_p7 }
  0x9e   : > { %1492 = vmatpush3.bf16.msra.mxu0 %v1491_v19  ;;  %1560 = vmatpush3.bf16.msra.mxu1 %v1491_v19  ;;  %v774_v19 = vld [vmem:[#allocation8 + $0x40] sm:$0xff] }
  0x9f   : > { %1493 = vmatprep.subr.bf16.mxu0 %v1845_v0  ;;  %1553 = vmatprep.subr.bf16.mxu1 %v1845_v0  ;;  %v1536_v21 = vpack.c.bf16 %v775_v20, %v774_v19 }
  0xa2   : > { %1495 = vmatpush3.bf16.msra.mxu0 %v1494_v22  ;;  %1561 = vmatpush3.bf16.msra.mxu1 %v1494_v22  ;;  %v776_v22 = vld [vmem:[#allocation8 + $0x50] sm:$0xff] }
  0xa3   : > { %1496 = vmatprep.subr.bf16.mxu0 %v1845_v0  ;;  %1554 = vmatprep.subr.bf16.mxu1 %v1845_v0  ;;  %v1539_v24 = vpack.c.bf16 %v777_v23, %v776_v22 }
  0xa6   : > { %1498 = vmatpush3.bf16.msra.mxu0 %v1497_v25  ;;  %1562 = vmatpush3.bf16.msra.mxu1 %v1497_v25  ;;  %v778_v25 = vld [vmem:[#allocation8 + $0x60] sm:$0xff] }
  0xa7   : > { %1499 = vmatprep.subr.bf16.mxu1 %v1845_v0  ;;  %1523 = vmatprep.subr.bf16.mxu0 %v1845_v0  ;;  %v1542_v27 = vpack.c.bf16 %v779_v26, %v778_v25 }
  0xa9   : > { %1241 = vmatmul.mubr.f32.vlgmr.msra.gmra.mrb[0].mxu0 %v343_v28  ;;  %1271 = vmatmul.mubr.f32.vlgmr.msra.gmra.mrb[0].mxu1 %v353_v29  ;;  %v2212_v28 = vld [vmem:[%s2444_s2] ss:$0 sm:$0xff] }
  0xaa   : > { %1243 = vmatprep.mubr.msk.f32.mxu0 %vm1846_vm0, %v1847_v1  ;;  %1273 = vmatprep.mubr.msk.f32.mxu1 %vm1846_vm0, %v1847_v1 }
  0xab   : > { %1501 = vmatpush3.bf16.msra.mxu1 %v1500_v30  ;;  %1525 = vmatpush3.bf16.msra.mxu0 %v1524_v10 }
  0xac   : > { %1502 = vmatprep.subr.bf16.mxu1 %v1845_v0  ;;  %1526 = vmatprep.subr.bf16.mxu0 %v1845_v0 }
  0xad   : > { %1244 = vmatmul.mubr.f32.gmra.mrb[2].mxu0 %v344_v33  ;;  %1274 = vmatmul.mubr.f32.gmra.mrb[2].mxu1 %v354_v34 }
  0xae   : > { %1246 = vmatprep.mubr.msk.f32.mxu0 %vm1846_vm0, %v1847_v1  ;;  %1276 = vmatprep.mubr.msk.f32.mxu1 %vm1846_vm0, %v1847_v1 }
  0xaf   : > { %1504 = vmatpush3.bf16.msra.mxu1 %v1503_v35  ;;  %1528 = vmatpush3.bf16.msra.mxu0 %v1527_v12 }
  0xb0   : > { %1505 = vmatprep.subr.bf16.mxu1 %v1845_v0  ;;  %1529 = vmatprep.subr.bf16.mxu0 %v1845_v0 }
  0xb1   : > { %1247 = vmatmul.mubr.f32.gmra.mrb[4].mxu0 %v345_v38  ;;  %1277 = vmatmul.mubr.f32.gmra.mrb[4].mxu1 %v355_v39 }
  0xb2   : > { %1249 = vmatprep.mubr.msk.f32.mxu0 %vm1846_vm0, %v1847_v1  ;;  %1279 = vmatprep.mubr.msk.f32.mxu1 %vm1846_vm0, %v1847_v1 }
  0xb3   : > { %1507 = vmatpush3.bf16.msra.mxu1 %v1506_v40  ;;  %1531 = vmatpush3.bf16.msra.mxu0 %v1530_v15 }
  0xb4   : > { %1508 = vmatprep.subr.bf16.mxu1 %v1845_v0  ;;  %1532 = vmatprep.subr.bf16.mxu0 %v1845_v0 }
  0xb5   : > { %1250 = vmatmul.mubr.f32.gmra.mrb[6].mxu0 %v346_v43  ;;  %1280 = vmatmul.mubr.f32.gmra.mrb[6].mxu1 %v356_v44 }
  0xb6   : > { %1252 = vmatprep.mubr.msk.f32.mxu0 %vm1846_vm0, %v1847_v1  ;;  %1282 = vmatprep.mubr.msk.f32.mxu1 %vm1846_vm0, %v1847_v1 }
  0xb7   : > { %1510 = vmatpush3.bf16.msra.mxu1 %v1509_v45  ;;  %1534 = vmatpush3.bf16.msra.mxu0 %v1533_v18 }
  0xb8   : > { %1511 = vmatprep.subr.bf16.mxu1 %v1845_v0  ;;  %1535 = vmatprep.subr.bf16.mxu0 %v1845_v0 }
  0xb9   : > { %1253 = vmatmul.mubr.f32.gmra.mrb[8].mxu0 %v347_v48  ;;  %1283 = vmatmul.mubr.f32.gmra.mrb[8].mxu1 %v357_v49 }
  0xba   : > { %1255 = vmatprep.mubr.msk.f32.mxu0 %vm1846_vm0, %v1847_v1  ;;  %1285 = vmatprep.mubr.msk.f32.mxu1 %vm1846_vm0, %v1847_v1 }
  0xbb   : > { %1513 = vmatpush3.bf16.msra.mxu1 %v1512_v50  ;;  %1537 = vmatpush3.bf16.msra.mxu0 %v1536_v21 }
  0xbc   : > { %1514 = vmatprep.subr.bf16.mxu1 %v1845_v0  ;;  %1538 = vmatprep.subr.bf16.mxu0 %v1845_v0 }
  0xbd   : > { %1256 = vmatmul.mubr.f32.gmra.mrb[10].mxu0 %v348_v53  ;;  %1286 = vmatmul.mubr.f32.gmra.mrb[10].mxu1 %v358_v54 }
  0xbe   : > { %1258 = vmatprep.mubr.msk.f32.mxu0 %vm1846_vm0, %v1847_v1  ;;  %1288 = vmatprep.mubr.msk.f32.mxu1 %vm1846_vm0, %v1847_v1 }
  0xbf   : > { %1516 = vmatpush3.bf16.msra.mxu1 %v1515_v55  ;;  %1540 = vmatpush3.bf16.msra.mxu0 %v1539_v24 }
  0xc0   : > { %1517 = vmatprep.subr.bf16.mxu1 %v1845_v0  ;;  %1541 = vmatprep.subr.bf16.mxu0 %v1845_v0 }
  0xc1   : > { %1259 = vmatmul.mubr.f32.gmra.mrb[12].mxu0 %v349_v58  ;;  %1289 = vmatmul.mubr.f32.gmra.mrb[12].mxu1 %v359_v59 }
  0xc2   : > { %1261 = vmatprep.mubr.msk.f32.mxu0 %vm1846_vm0, %v1847_v1  ;;  %1291 = vmatprep.mubr.msk.f32.mxu1 %vm1846_vm0, %v1847_v1 }
  0xc3   : > { %1519 = vmatpush3.bf16.msra.mxu1 %v1518_v60  ;;  %1543 = vmatpush3.bf16.msra.mxu0 %v1542_v27 }
  0xc4   : > { %1520 = vmatprep.subr.bf16.mxu1 %v1845_v0  ;;  %1544 = vmatprep.subr.bf16.mxu0 %v1845_v0 }
  0xc5   : > { %1262 = vmatmul.mubr.f32.gmra.mrb[14].mxu0 %v350_v61  ;;  %1292 = vmatmul.mubr.f32.gmra.mrb[14].mxu1 %v360_v62 }
  0xc6   : > { %1264 = vmatprep.mubr.msk.f32.mxu0 %vm1846_vm0, %v1847_v1  ;;  %1294 = vmatprep.mubr.msk.f32.mxu1 %vm1846_vm0, %v1847_v1 }
  0xc7   : > { %1522 = vmatpush3.bf16.msra.mxu1 %v1521_v6 }
  0xc9   : > { %1265 = vmatmul.mubr.f32.gmra.mrb[16].mxu0 %v351_v63  ;;  %1295 = vmatmul.mubr.f32.gmra.mrb[16].mxu1 %v361_v2 }
  0xca   : > { %1267 = vmatprep.mubr.msk.f32.mxu0 %vm1846_vm0, %v1847_v1  ;;  %1329 = vmatprep.mubr.msk.f32.mxu1 %vm1846_vm0, %v1847_v1 }
  0xcd   : > { %1268 = vmatmul.mubr.f32.gmra.mrb[18].mxu0 %v352_v3 }
  0xce   : > { %1418 = vmatprep.mubr.msk.f32.mxu0 %vm1846_vm0, %v1847_v1 }
 0x17c   : > { %v451_v29 = vpop.f32.mrb[0].mxu0  ;;  %v2214_v30 = vpop.f32.mrb[0].mxu1 }
 0x17d   : > { %v452_v31 = vadd.f32 %v2212_v28, %v451_v29  ;;  %v1242_v32 = vpop.f32.mrb[1].mxu0  ;;  %v1272_v33 = vpop.f32.mrb[1].mxu1  ;;  %v502_v26 = vadd.f32 %v2212_v28, %v2214_v30 }
 0x17f   : > { %v545_v34 = vmax.f32 %v452_v31, 0.0  ;;  %v555_v29 = vmax.f32 %v502_v26, 0.0 }
 0x180   : > { %v456_v35 = vpop.f32.mrb[2].mxu0  ;;  %v2217_v36 = vpop.f32.mrb[2].mxu1 }
 0x181   : > { %v457_v37 = vadd.f32 %v2212_v28, %v456_v35  ;;  %v1245_v38 = vpop.f32.mrb[3].mxu0  ;;  %1330 = vmatmul.mubr.f32.vlgmr.msra.gmra.mrb[18].mxu1 %v545_v34  ;;  %v1275_v0 = vpop.f32.mrb[3].mxu1  ;;  %v507_v31 = vadd.f32 %v2212_v28, %v2217_v36 }
 0x182   : > { %1332 = vmatprep.mubr.msk.f32.mxu1 %vm1846_vm0, %v1847_v1 }
 0x183   : > { %v546_v39 = vmax.f32 %v457_v37, 0.0  ;;  %v556_v32 = vmax.f32 %v507_v31, 0.0 }
 0x184   : > { %v461_v40 = vpop.f32.mrb[4].mxu0  ;;  %v2222_v41 = vpop.f32.mrb[4].mxu1 }
 0x185   : > { %v462_v42 = vadd.f32 %v2212_v28, %v461_v40  ;;  %v1248_v43 = vpop.f32.mrb[5].mxu0  ;;  %1333 = vmatmul.mubr.f32.gmra.mrb[20].mxu1 %v546_v39  ;;  %v1278_v44 = vpop.f32.mrb[5].mxu1  ;;  %v512_v33 = vadd.f32 %v2212_v28, %v2222_v41 }
 0x186   : > { %1335 = vmatprep.mubr.msk.f32.mxu1 %vm1846_vm0, %v1847_v1  ;;  %v2287_v44 = vld [vmem:[%s2446_s4] ss:$0 sm:$0xff] }
 0x187   : > { %v547_v45 = vmax.f32 %v462_v42, 0.0  ;;  %v557_v30 = vmax.f32 %v512_v33, 0.0  ;;  %v781_v42 = vld [vmem:[#allocation8 + $0x78] sm:$0xff] }
 0x188   : > { %v466_v46 = vpop.f32.mrb[6].mxu0  ;;  %v2227_v47 = vpop.f32.mrb[6].mxu1 }
 0x189   : > { %v467_v48 = vadd.f32 %v2212_v28, %v466_v46  ;;  %v1251_v49 = vpop.f32.mrb[7].mxu0  ;;  %1336 = vmatmul.mubr.f32.gmra.mrb[22].mxu1 %v547_v45  ;;  %v1281_v50 = vpop.f32.mrb[7].mxu1  ;;  %v517_v34 = vadd.f32 %v2212_v28, %v2227_v47 }
 0x18a   : > { %1338 = vmatprep.mubr.msk.f32.mxu1 %vm1846_vm0, %v1847_v1 }
 0x18b   : > { %v548_v51 = vmax.f32 %v467_v48, 0.0  ;;  %v558_v35 = vmax.f32 %v517_v34, 0.0 }
 0x18c   : > { %v471_v52 = vpop.f32.mrb[8].mxu0  ;;  %v2232_v53 = vpop.f32.mrb[8].mxu1 }
 0x18d   : > { %v472_v54 = vadd.f32 %v2212_v28, %v471_v52  ;;  %v1254_v55 = vpop.f32.mrb[9].mxu0  ;;  %1339 = vmatmul.mubr.f32.gmra.mrb[24].mxu1 %v548_v51  ;;  %v1284_v56 = vpop.f32.mrb[9].mxu1  ;;  %v522_v36 = vadd.f32 %v2212_v28, %v2232_v53 }
 0x18e   : > { %1341 = vmatprep.mubr.msk.f32.mxu1 %vm1846_vm0, %v1847_v1 }
 0x18f   : > { %v549_v57 = vmax.f32 %v472_v54, 0.0  ;;  %v559_v37 = vmax.f32 %v522_v36, 0.0 }
 0x190   : > { %v476_v58 = vpop.f32.mrb[10].mxu0  ;;  %v526_v59 = vpop.f32.mrb[10].mxu1 }
 0x191   : > { %v477_v60 = vadd.f32 %v2212_v28, %v476_v58  ;;  %v1257_v61 = vpop.f32.mrb[11].mxu0  ;;  %1342 = vmatmul.mubr.f32.gmra.mrb[26].mxu1 %v549_v57  ;;  %v1287_v62 = vpop.f32.mrb[11].mxu1  ;;  %v527_v38 = vadd.f32 %v2212_v28, %v526_v59 }
 0x192   : > { %1344 = vmatprep.mubr.msk.f32.mxu1 %vm1846_vm0, %v1847_v1 }
 0x193   : > { %v550_v63 = vmax.f32 %v477_v60, 0.0  ;;  %v560_v0 = vmax.f32 %v527_v38, 0.0 }
 0x194   : > { %v481_v2 = vpop.f32.mrb[12].mxu0  ;;  %v531_v3 = vpop.f32.mrb[12].mxu1 }
 0x195   : > { %v482_v4 = vadd.f32 %v2212_v28, %v481_v2  ;;  %v1260_v5 = vpop.f32.mrb[13].mxu0  ;;  %1345 = vmatmul.mubr.f32.gmra.mrb[28].mxu1 %v550_v63  ;;  %v532_v6 = vadd.f32 %v2212_v28, %v531_v3  ;;  %v1290_v7 = vpop.f32.mrb[13].mxu1 }
 0x196   : > { %1347 = vmatprep.mubr.msk.f32.mxu1 %vm1846_vm0, %v1847_v1 }
 0x197   : > { %v551_v8 = vmax.f32 %v482_v4, 0.0  ;;  %v561_v39 = vmax.f32 %v532_v6, 0.0 }
 0x198   : > { %v486_v9 = vpop.f32.mrb[14].mxu0  ;;  %v536_v10 = vpop.f32.mrb[14].mxu1 }
 0x199   : > { %v487_v11 = vadd.f32 %v2212_v28, %v486_v9  ;;  %v1263_v12 = vpop.f32.mrb[15].mxu0  ;;  %1348 = vmatmul.mubr.f32.gmra.mrb[30].mxu1 %v551_v8  ;;  %v537_v13 = vadd.f32 %v2212_v28, %v536_v10  ;;  %v1293_v14 = vpop.f32.mrb[15].mxu1 }
 0x19a   : > { %1350 = vmatprep.mubr.msk.f32.mxu1 %vm1846_vm0, %v1847_v1 }
 0x19b   : > { %v552_v15 = vmax.f32 %v487_v11, 0.0  ;;  %v562_v40 = vmax.f32 %v537_v13, 0.0 }
 0x19c   : > { %v491_v16 = vpop.f32.mrb[16].mxu0  ;;  %v541_v17 = vpop.f32.mrb[16].mxu1 }
 0x19d   : > { %v492_v18 = vadd.f32 %v2212_v28, %v491_v16  ;;  %v1266_v19 = vpop.f32.mrb[17].mxu0  ;;  %1351 = vmatmul.mubr.f32.gmra.mrb[32].mxu1 %v552_v15  ;;  %v542_v20 = vadd.f32 %v2212_v28, %v541_v17  ;;  %v1296_v21 = vpop.f32.mrb[17].mxu1 }
 0x19e   : > { %1353 = vmatprep.mubr.msk.f32.mxu1 %vm1846_vm0, %v1847_v1 }
 0x19f   : > { %v553_v22 = vmax.f32 %v492_v18, 0.0  ;;  %v563_v41 = vmax.f32 %v542_v20, 0.0 }
 0x1a0   : > { %v496_v23 = vpop.f32.mrb[18].mxu0 }
 0x1a1   : > { %v497_v24 = vadd.f32 %v2212_v28, %v496_v23  ;;  %v1269_v25 = vpop.f32.mrb[19].mxu0  ;;  %1354 = vmatmul.mubr.f32.gmra.mrb[34].mxu1 %v553_v22  ;;  %v780_v28 = vld [vmem:[#allocation8 + $0x70] sm:$0xff] }
 0x1a2   : > { %1356 = vmatprep.mubr.msk.f32.mxu1 %vm1846_vm0, %v1847_v1  ;;  %v1545_v43 = vpack.c.bf16 %v781_v42, %v780_v28 }
 0x1a3   : > { %v554_v27 = vmax.f32 %v497_v24, 0.0 }
 0x1a4   : > { %1546 = vmatpush3.bf16.msra.mxu0 %v1545_v43 }
 0x1a5   : > { %1357 = vmatmul.mubr.f32.gmra.mrb[36].mxu1 %v554_v27 }
 0x1a6   : > { %1359 = vmatprep.mubr.msk.f32.mxu1 %vm1846_vm0, %v1847_v1 }
 0x1a9   : > { %1360 = vmatmul.mubr.f32.gmra.mrb[38].mxu1 %v555_v29 }
 0x1aa   : > { %1362 = vmatprep.mubr.msk.f32.mxu1 %vm1846_vm0, %v1847_v1 }
 0x1ad   : > { %1363 = vmatmul.mubr.f32.gmra.mrb[40].mxu1 %v556_v32 }
 0x1ae   : > { %1365 = vmatprep.mubr.msk.f32.mxu1 %vm1846_vm0, %v1847_v1 }
 0x1b1   : > { %1366 = vmatmul.mubr.f32.gmra.mrb[42].mxu1 %v557_v30 }
 0x1b2   : > { %1368 = vmatprep.mubr.msk.f32.mxu1 %vm1846_vm0, %v1847_v1 }
 0x1b5   : > { %1369 = vmatmul.mubr.f32.gmra.mrb[44].mxu1 %v558_v35 }
 0x1b6   : > { %1371 = vmatprep.mubr.msk.f32.mxu1 %vm1846_vm0, %v1847_v1 }
 0x1b9   : > { %1372 = vmatmul.mubr.f32.gmra.mrb[46].mxu1 %v559_v37 }
 0x1ba   : > { %1374 = vmatprep.mubr.msk.f32.mxu1 %vm1846_vm0, %v1847_v1 }
 0x1bd   : > { %1375 = vmatmul.mubr.f32.gmra.mrb[48].mxu1 %v560_v0 }
 0x1be   : > { %1377 = vmatprep.mubr.msk.f32.mxu1 %vm1846_vm0, %v1847_v1 }
 0x1c1   : > { %1378 = vmatmul.mubr.f32.gmra.mrb[50].mxu1 %v561_v39 }
 0x1c2   : > { %1380 = vmatprep.mubr.msk.f32.mxu1 %vm1846_vm0, %v1847_v1 }
 0x1c5   : > { %1381 = vmatmul.mubr.f32.gmra.mrb[52].mxu1 %v562_v40 }
 0x1c6   : > { %1383 = vmatprep.mubr.msk.f32.mxu1 %vm1846_vm0, %v1847_v1 }
 0x1c9   : > { %1384 = vmatmul.mubr.f32.gmra.mrb[54].mxu1 %v563_v41 }
 0x254   : > { %v653_v45 = vpop.f32.mrb[18].mxu1 }
 0x255   : > { %v654_v46 = vadd.f32 %v2287_v44, %v653_v45  ;;  %v1331_v47 = vpop.f32.mrb[19].mxu1 }
 0x257   : > { %v747_v48 = vmax.f32 %v654_v46, 0.0 }
 0x258   : > { %v658_v49 = vpop.f32.mrb[20].mxu1 }
 0x259   : > { %v659_v50 = vadd.f32 %v2287_v44, %v658_v49  ;;  %v1334_v51 = vpop.f32.mrb[21].mxu1  ;;  %1419 = vmatmul.mubr.f32.vlgmr.msra.gmra.mrb[20].mxu0 %v747_v48 }
 0x25a   : > { %1421 = vmatprep.mubr.msk.f32.mxu0 %vm1846_vm0, %v1847_v1 }
 0x25b   : > { %v748_v52 = vmax.f32 %v659_v50, 0.0 }
 0x25c   : > { %v663_v53 = vpop.f32.mrb[22].mxu1 }
 0x25d   : > { %v664_v54 = vadd.f32 %v2287_v44, %v663_v53  ;;  %v1337_v55 = vpop.f32.mrb[23].mxu1  ;;  %1422 = vmatmul.mubr.f32.gmra.mrb[22].mxu0 %v748_v52 }
 0x25e   : > { %1424 = vmatprep.mubr.msk.f32.mxu0 %vm1846_vm0, %v1847_v1 }
 0x25f   : > { %v749_v56 = vmax.f32 %v664_v54, 0.0 }
 0x260   : > { %v668_v57 = vpop.f32.mrb[24].mxu1 }
 0x261   : > { %v669_v58 = vadd.f32 %v2287_v44, %v668_v57  ;;  %v1340_v59 = vpop.f32.mrb[25].mxu1  ;;  %1425 = vmatmul.mubr.f32.gmra.mrb[24].mxu0 %v749_v56 }
 0x262   : > { %1427 = vmatprep.mubr.msk.f32.mxu0 %vm1846_vm0, %v1847_v1  ;;  %v2347_v59 = vld [vmem:[%s2448_s6] ss:$0 sm:$0xff] }
 0x263   : > { %v750_v60 = vmax.f32 %v669_v58, 0.0 }
 0x264   : > { %v673_v61 = vpop.f32.mrb[26].mxu1 }
 0x265   : > { %v674_v62 = vadd.f32 %v2287_v44, %v673_v61  ;;  %v1343_v63 = vpop.f32.mrb[27].mxu1  ;;  %1428 = vmatmul.mubr.f32.gmra.mrb[26].mxu0 %v750_v60 }
 0x266   : > { %1430 = vmatprep.mubr.msk.f32.mxu0 %vm1846_vm0, %v1847_v1 }
 0x267   : > { %v751_v2 = vmax.f32 %v674_v62, 0.0 }
 0x268   : > { %v678_v3 = vpop.f32.mrb[28].mxu1 }
 0x269   : > { %v679_v4 = vadd.f32 %v2287_v44, %v678_v3  ;;  %v1346_v5 = vpop.f32.mrb[29].mxu1  ;;  %1431 = vmatmul.mubr.f32.gmra.mrb[28].mxu0 %v751_v2 }
 0x26a   : > { %1433 = vmatprep.mubr.msk.f32.mxu0 %vm1846_vm0, %v1847_v1 }
 0x26b   : > { %v752_v6 = vmax.f32 %v679_v4, 0.0 }
 0x26c   : > { %v683_v7 = vpop.f32.mrb[30].mxu1 }
 0x26d   : > { %v684_v8 = vadd.f32 %v2287_v44, %v683_v7  ;;  %v1349_v9 = vpop.f32.mrb[31].mxu1  ;;  %1434 = vmatmul.mubr.f32.gmra.mrb[30].mxu0 %v752_v6 }
 0x26e   : > { %1436 = vmatprep.mubr.msk.f32.mxu0 %vm1846_vm0, %v1847_v1 }
 0x26f   : > { %v753_v10 = vmax.f32 %v684_v8, 0.0 }
 0x270   : > { %v688_v11 = vpop.f32.mrb[32].mxu1 }
 0x271   : > { %v689_v12 = vadd.f32 %v2287_v44, %v688_v11  ;;  %v1352_v13 = vpop.f32.mrb[33].mxu1  ;;  %1437 = vmatmul.mubr.f32.gmra.mrb[32].mxu0 %v753_v10 }
 0x272   : > { %1439 = vmatprep.mubr.msk.f32.mxu0 %vm1846_vm0, %v1847_v1 }
 0x273   : > { %v754_v14 = vmax.f32 %v689_v12, 0.0 }
 0x274   : > { %v693_v15 = vpop.f32.mrb[34].mxu1 }
 0x275   : > { %v694_v16 = vadd.f32 %v2287_v44, %v693_v15  ;;  %v1355_v17 = vpop.f32.mrb[35].mxu1  ;;  %1440 = vmatmul.mubr.f32.gmra.mrb[34].mxu0 %v754_v14 }
 0x276   : > { %1442 = vmatprep.mubr.msk.f32.mxu0 %vm1846_vm0, %v1847_v1 }
 0x277   : > { %v755_v18 = vmax.f32 %v694_v16, 0.0 }
 0x278   : > { %v698_v19 = vpop.f32.mrb[36].mxu1 }
 0x279   : > { %v699_v20 = vadd.f32 %v2287_v44, %v698_v19  ;;  %v1358_v21 = vpop.f32.mrb[37].mxu1  ;;  %1443 = vmatmul.mubr.f32.gmra.mrb[36].mxu0 %v755_v18 }
 0x27a   : > { %1445 = vmatprep.mubr.msk.f32.mxu0 %vm1846_vm0, %v1847_v1 }
 0x27b   : > { %v756_v22 = vmax.f32 %v699_v20, 0.0 }
 0x27c   : > { %v703_v23 = vpop.f32.mrb[38].mxu1 }
 0x27d   : > { %v704_v24 = vadd.f32 %v2287_v44, %v703_v23  ;;  %v1361_v25 = vpop.f32.mrb[39].mxu1  ;;  %1446 = vmatmul.mubr.f32.gmra.mrb[38].mxu0 %v756_v22 }
 0x27e   : > { %1448 = vmatprep.mubr.msk.f32.mxu0 %vm1846_vm0, %v1847_v1 }
 0x27f   : > { %v757_v26 = vmax.f32 %v704_v24, 0.0 }
 0x280   : > { %v708_v27 = vpop.f32.mrb[40].mxu1 }
 0x281   : > { %v709_v29 = vadd.f32 %v2287_v44, %v708_v27  ;;  %v1364_v31 = vpop.f32.mrb[41].mxu1  ;;  %1449 = vmatmul.mubr.f32.gmra.mrb[40].mxu0 %v757_v26 }
 0x282   : > { %1451 = vmatprep.mubr.msk.f32.mxu0 %vm1846_vm0, %v1847_v1 }
 0x283   : > { %v758_v32 = vmax.f32 %v709_v29, 0.0 }
 0x284   : > { %v713_v33 = vpop.f32.mrb[42].mxu1 }
 0x285   : > { %v714_v30 = vadd.f32 %v2287_v44, %v713_v33  ;;  %v1367_v34 = vpop.f32.mrb[43].mxu1  ;;  %1452 = vmatmul.mubr.f32.gmra.mrb[42].mxu0 %v758_v32 }
 0x286   : > { %1454 = vmatprep.mubr.msk.f32.mxu0 %vm1846_vm0, %v1847_v1 }
 0x287   : > { %v759_v35 = vmax.f32 %v714_v30, 0.0 }
 0x288   : > { %v718_v36 = vpop.f32.mrb[44].mxu1 }
 0x289   : > { %v719_v37 = vadd.f32 %v2287_v44, %v718_v36  ;;  %v1370_v38 = vpop.f32.mrb[45].mxu1  ;;  %1455 = vmatmul.mubr.f32.gmra.mrb[44].mxu0 %v759_v35 }
 0x28a   : > { %1457 = vmatprep.mubr.msk.f32.mxu0 %vm1846_vm0, %v1847_v1 }
 0x28b   : > { %v760_v0 = vmax.f32 %v719_v37, 0.0 }
 0x28c   : > { %v723_v39 = vpop.f32.mrb[46].mxu1 }
 0x28d   : > { %v724_v40 = vadd.f32 %v2287_v44, %v723_v39  ;;  %v1373_v41 = vpop.f32.mrb[47].mxu1  ;;  %1458 = vmatmul.mubr.f32.gmra.mrb[46].mxu0 %v760_v0 }
 0x28e   : > { %1460 = vmatprep.mubr.msk.f32.mxu0 %vm1846_vm0, %v1847_v1 }
 0x28f   : > { %v761_v28 = vmax.f32 %v724_v40, 0.0 }
 0x290   : > { %v728_v42 = vpop.f32.mrb[48].mxu1 }
 0x291   : > { %v729_v43 = vadd.f32 %v2287_v44, %v728_v42  ;;  %v1376_v45 = vpop.f32.mrb[49].mxu1  ;;  %1461 = vmatmul.mubr.f32.gmra.mrb[48].mxu0 %v761_v28 }
 0x292   : > { %1463 = vmatprep.mubr.msk.f32.mxu0 %vm1846_vm0, %v1847_v1 }
 0x293   : > { %v762_v46 = vmax.f32 %v729_v43, 0.0 }
 0x294   : > { %v733_v47 = vpop.f32.mrb[50].mxu1 }
 0x295   : > { %v734_v48 = vadd.f32 %v2287_v44, %v733_v47  ;;  %v1379_v49 = vpop.f32.mrb[51].mxu1  ;;  %1464 = vmatmul.mubr.f32.gmra.mrb[50].mxu0 %v762_v46 }
 0x296   : > { %1466 = vmatprep.mubr.msk.f32.mxu0 %vm1846_vm0, %v1847_v1 }
 0x297   : > { %v763_v50 = vmax.f32 %v734_v48, 0.0 }
 0x298   : > { %v738_v51 = vpop.f32.mrb[52].mxu1 }
 0x299   : > { %v739_v52 = vadd.f32 %v2287_v44, %v738_v51  ;;  %v1382_v53 = vpop.f32.mrb[53].mxu1  ;;  %1467 = vmatmul.mubr.f32.gmra.mrb[52].mxu0 %v763_v50 }
 0x29a   : > { %1469 = vmatprep.mubr.msk.f32.mxu0 %vm1846_vm0, %v1847_v1 }
 0x29b   : > { %v764_v54 = vmax.f32 %v739_v52, 0.0 }
 0x29c   : > { %v743_v55 = vpop.f32.mrb[54].mxu1 }
 0x29d   : > { %v744_v56 = vadd.f32 %v2287_v44, %v743_v55  ;;  %v1385_v57 = vpop.f32.mrb[55].mxu1  ;;  %1470 = vmatmul.mubr.f32.gmra.mrb[54].mxu0 %v764_v54 }
 0x29e   : > { %1472 = vmatprep.mubr.msk.f32.mxu0 %vm1846_vm0, %v1847_v1 }
 0x29f   : > { %v765_v58 = vmax.f32 %v744_v56, 0.0 }
 0x2a1   : > { %1473 = vmatmul.mubr.f32.gmra.mrb[56].mxu0 %v765_v58 }
 0x32c   : > { %v855_v60 = vpop.f32.mrb[20].mxu0 }
 0x32d   : > { %v856_v61 = vadd.f32 %v2347_v59, %v855_v60  ;;  %v1420_v62 = vpop.f32.mrb[21].mxu0 }
 0x32f   : > { %949 = vst [vmem:[%s2352_s16] sm:$0xff] %v856_v61 }
 0x330   : > { %v860_v1 = vpop.f32.mrb[22].mxu0 }
 0x331   : > { %v861_v44 = vadd.f32 %v2347_v59, %v860_v1  ;;  %v1423_v63 = vpop.f32.mrb[23].mxu0 }
 0x333   : > { %950 = vst [vmem:[%s2352_s16 + $0x8] sm:$0xff] %v861_v44 }
 0x334   : > { %v865_v2 = vpop.f32.mrb[24].mxu0 }
 0x335   : > { %v866_v3 = vadd.f32 %v2347_v59, %v865_v2  ;;  %v1426_v4 = vpop.f32.mrb[25].mxu0 }
 0x337   : > { %951 = vst [vmem:[%s2352_s16 + $0x10] sm:$0xff] %v866_v3 }
 0x338   : > { %v870_v5 = vpop.f32.mrb[26].mxu0 }
 0x339   : > { %v871_v6 = vadd.f32 %v2347_v59, %v870_v5  ;;  %v1429_v7 = vpop.f32.mrb[27].mxu0 }
 0x33b   : > { %952 = vst [vmem:[%s2352_s16 + $0x18] sm:$0xff] %v871_v6 }
 0x33c   : > { %v875_v8 = vpop.f32.mrb[28].mxu0 }
 0x33d   : > { %v876_v9 = vadd.f32 %v2347_v59, %v875_v8  ;;  %v1432_v10 = vpop.f32.mrb[29].mxu0 }
 0x33f   : > { %953 = vst [vmem:[%s2352_s16 + $0x20] sm:$0xff] %v876_v9 }
 0x340   : > { %v880_v11 = vpop.f32.mrb[30].mxu0 }
 0x341   : > { %v881_v12 = vadd.f32 %v2347_v59, %v880_v11  ;;  %v1435_v13 = vpop.f32.mrb[31].mxu0 }
 0x343   : > { %954 = vst [vmem:[%s2352_s16 + $0x28] sm:$0xff] %v881_v12 }
 0x344   : > { %v885_v14 = vpop.f32.mrb[32].mxu0 }
 0x345   : > { %v886_v15 = vadd.f32 %v2347_v59, %v885_v14  ;;  %v1438_v16 = vpop.f32.mrb[33].mxu0 }
 0x347   : > { %955 = vst [vmem:[%s2352_s16 + $0x30] sm:$0xff] %v886_v15 }
 0x348   : > { %v890_v17 = vpop.f32.mrb[34].mxu0 }
 0x349   : > { %v891_v18 = vadd.f32 %v2347_v59, %v890_v17  ;;  %v1441_v19 = vpop.f32.mrb[35].mxu0 }
 0x34b   : > { %956 = vst [vmem:[%s2352_s16 + $0x38] sm:$0xff] %v891_v18 }
 0x34c   : > { %v895_v20 = vpop.f32.mrb[36].mxu0 }
 0x34d   : > { %v896_v21 = vadd.f32 %v2347_v59, %v895_v20  ;;  %v1444_v22 = vpop.f32.mrb[37].mxu0 }
 0x34f   : > { %957 = vst [vmem:[%s2352_s16 + $0x40] sm:$0xff] %v896_v21 }
 0x350   : > { %v900_v23 = vpop.f32.mrb[38].mxu0 }
 0x351   : > { %v901_v24 = vadd.f32 %v2347_v59, %v900_v23  ;;  %v1447_v25 = vpop.f32.mrb[39].mxu0 }
 0x353   : > { %958 = vst [vmem:[%s2352_s16 + $0x48] sm:$0xff] %v901_v24 }
 0x354   : > { %v905_v26 = vpop.f32.mrb[40].mxu0 }
 0x355   : > { %v906_v27 = vadd.f32 %v2347_v59, %v905_v26  ;;  %v1450_v29 = vpop.f32.mrb[41].mxu0 }
 0x357   : > { %959 = vst [vmem:[%s2352_s16 + $0x50] sm:$0xff] %v906_v27 }
 0x358   : > { %v910_v31 = vpop.f32.mrb[42].mxu0 }
 0x359   : > { %v911_v32 = vadd.f32 %v2347_v59, %v910_v31  ;;  %v1453_v33 = vpop.f32.mrb[43].mxu0 }
 0x35b   : > { %960 = vst [vmem:[%s2352_s16 + $0x58] sm:$0xff] %v911_v32 }
 0x35c   : > { %v915_v30 = vpop.f32.mrb[44].mxu0 }
 0x35d   : > { %v916_v34 = vadd.f32 %v2347_v59, %v915_v30  ;;  %v1456_v35 = vpop.f32.mrb[45].mxu0 }
 0x35f   : > { %961 = vst [vmem:[%s2352_s16 + $0x60] sm:$0xff] %v916_v34 }
 0x360   : > { %v920_v36 = vpop.f32.mrb[46].mxu0 }
 0x361   : > { %v921_v37 = vadd.f32 %v2347_v59, %v920_v36  ;;  %v1459_v38 = vpop.f32.mrb[47].mxu0 }
 0x363   : > { %962 = vst [vmem:[%s2352_s16 + $0x68] sm:$0xff] %v921_v37 }
 0x364   : > { %v925_v0 = vpop.f32.mrb[48].mxu0 }
 0x365   : > { %v926_v39 = vadd.f32 %v2347_v59, %v925_v0  ;;  %v1462_v40 = vpop.f32.mrb[49].mxu0 }
 0x367   : > { %963 = vst [vmem:[%s2352_s16 + $0x70] sm:$0xff] %v926_v39 }
 0x368   : > { %v930_v41 = vpop.f32.mrb[50].mxu0 }
 0x369   : > { %v931_v28 = vadd.f32 %v2347_v59, %v930_v41  ;;  %v1465_v42 = vpop.f32.mrb[51].mxu0 }
 0x36b   : > { %964 = vst [vmem:[%s2352_s16 + $0x78] sm:$0xff] %v931_v28 }
 0x36c   : > { %v935_v43 = vpop.f32.mrb[52].mxu0 }
 0x36d   : > { %v936_v45 = vadd.f32 %v2347_v59, %v935_v43  ;;  %v1468_v46 = vpop.f32.mrb[53].mxu0 }
 0x36f   : > { %965 = vst [vmem:[%s2352_s16 + $0x80] sm:$0xff] %v936_v45 }
 0x370   : > { %v940_v47 = vpop.f32.mrb[54].mxu0 }
 0x371   : > { %v941_v48 = vadd.f32 %v2347_v59, %v940_v47  ;;  %v1471_v49 = vpop.f32.mrb[55].mxu0 }
 0x373   : > { %966 = vst [vmem:[%s2352_s16 + $0x88] sm:$0xff] %v941_v48 }
 0x374   : > { %v945_v50 = vpop.f32.mrb[56].mxu0 }
 0x375   : > { %v946_v51 = vadd.f32 %v2347_v59, %v945_v50  ;;  %v1474_v52 = vpop.f32.mrb[57].mxu0 }
 0x377   : > { %967 = vst [vmem:[%s2352_s16 + $0x90] sm:$0xff] %v946_v51 }
 0x378   : > { %1776 = shalt.err (!%p1773_p4)
}
 0x379   : > { %s1777_s11 = scalar_lea.hbm %s2394_s29, 2432  ;;  %s1781_s20 = scalar_lea.hbm %s2449_s7, 4864 }
 0x37a   : > { %p1778_p9 = scmp.ne.s32.totalorder %s2394_s29, %s1777_s11  ;;  %p1782_p8 = scmp.lt.u32.totalorder %s2394_s29, %s2449_s7 }
 0x37b   : > { %p1783_p13 = scmp.lt.u32.totalorder %s1781_s20, %s1777_s11  ;;  %p1785_p10 = scmp.lt.u32.totalorder %s1777_s11, %s2394_s29 }
 0x37c   : > { %p1779_p0 = pnand %p1778_p9, %p2045_p5 }
 0x37d   : > { %p1784_p6 = por %p1783_p13, %p1782_p8 }
 0x37e   : > { %p1780_p11 = pneg %p1779_p0 }
 0x37f   : > { %p1786_p3 = por %p1785_p10, %p1784_p6 }
 0x381   : > { %p1787_p7 = pnand %p1786_p3, %p1780_p11 }
 0x383   : > { %1790 = shalt.err (!%p1787_p7)
}
 0x384   : > { %s1849_s15 = smov 128   ;;  %s1850_s17 = smov 8  }
 0x385   : > { %1579 = dma.vmem_to_hbm [thread:$0]  (%p2045_p5), %s2396_s13, 2432, %s2394_s29, %s969_s28, %s1849_s15, %s1849_s15, %s1850_s17  }
 0x386 PF: > { %s2473_s10 = sld [smem:[#allocation15_spill]]  ;;  %s997_s23 = sand.u32 1, %s1825_s24  }
 0x387   : > { %p2475_p1 = scmp.ge.s32.totalorder %s1837_s27, 2  ;;  %s998_s30 = scalar_lea.sflag [#allocation4], %s997_s23 }
 0x38c   : > { %p2474_p12 = scmp.ne.s32.totalorder %s2473_s10, 0 }
 0x38e   : > { %p1596_p2 = pnand %p2475_p1, %p2474_p12 }
 0x390   : > { %1820 = dma.done.wait (!%p1596_p2), %s998_s30, 2432  }
 0x391   : > { %1822 = vsyncadd (!%p1596_p2), %s998_s30, 4294964864  ;;  %p22_p4 = scmp.ge.s32.totalorder %s2031_s22, 4   ;;  %s2476_s24 = smov %s1829_s25 }
 0x392   : > { %s2477_s25 = smov %s1833_s26  ;;  %s2478_s26 = smov %s2041_s18 }
 0x393   : > { %s2479_s27 = smov %s2031_s22  ;;  %24 = sbr.rel (!%p22_p4) target bundleno = 7 (0x7), region = 105 }
 0x39a   :  { %1003 = vsyncpa [#allocation3], 1 }
 0x39b   :  { %1005 = vsyncpa [#allocation3 + $0x1], 1 }
 0x39c   :  { %1006 = vsyncpa [#allocation6], 1 }
 0x39d   :  { %1007 = vsyncpa [#allocation9], 1 }
 0x39e   :  { %1008 = vsyncpa [#allocation4], 1 }
 0x39f   :  { %1010 = vsyncpa [#allocation4 + $0x1], 1 }

// kernel: tpu_custom_call.1
= control target key start
LH: loop header
LB: loop body
LE: loop exit
PB: predicated region body
PF: predicated region fallthrough
CT: control target
= control target key end

     0   :  { %12 = vsyncpa [#allocation3], 0  ;;  %s2442_s0 = inlined_call_operand.hbm [shape: f32[304,128], index: 0, kind: input, shape index: {}]   ;;  %s2443_s1 = inlined_call_operand.hbm [shape: f32[128,128], index: 1, kind: input, shape index: {}]   ;;  %s2444_s2 = inlined_call_operand.vmem [shape: f32[1,128], index: 2, kind: input, shape index: {}]   ;;  %s2445_s3 = inlined_call_operand.hbm [shape: f32[128,128], index: 3, kind: input, shape index: {}]   ;;  %s2446_s4 = inlined_call_operand.vmem [shape: f32[1,128], index: 4, kind: input, shape index: {}]   ;;  %s2447_s5 = inlined_call_operand.hbm [shape: f32[128,128], index: 5, kind: input, shape index: {}]   ;;  %s2448_s6 = inlined_call_operand.vmem [shape: f32[1,128], index: 6, kind: input, shape index: {}]   ;;  %s2449_s7 = inlined_call_operand.hbm [shape: f32[304,128], index: 7, kind: output, shape index: {}]  }
   0x1   :  { %14 = vsyncpa [#allocation3 + $0x1], 0 }
   0x2   :  { %15 = vsyncpa [#allocation6], 0 }
   0x3   :  { %16 = vsyncpa [#allocation9], 0 }
   0x4   :  { %17 = vsyncpa [#allocation4], 0 }
   0x5   :  { %19 = vsyncpa [#allocation4 + $0x1], 0  ;;  %s1891_s24 = smov 0   ;;  %s1893_s25 = smov 0  }
   0x6   :  { %s1895_s26 = smov 0   ;;  %s1897_s27 = smov 0  }
   0x7 LB: > { %s1912_s28 = sadd.s32 4294967295, %s1837_s27   ;;  %s1084_s29 = sadd.s32 4294967294, %s1837_s27   ;;  %s1837_s27 = sphi %s1897_s27, %s2479_s27   ;;  %s1833_s26 = sphi %s1895_s26, %s2478_s26   ;;  %s1829_s25 = sphi %s1893_s25, %s2477_s25   ;;  %s1825_s24 = sphi %s1891_s24, %s2476_s24  }
   0x8   : > { %p45_p0 = scmp.ne.s32.totalorder %s1829_s25, %s1825_s24  ;;  %p2450_p1 = scmp.eq.s32.totalorder %s1912_s28, 0 }
   0x9   : > { %p201_p3 = scmp.eq.s32.totalorder %s1084_s29, 1  ;;  %p1085_p5 = scmp.ge.s32.totalorder %s1837_s27, 1 }
   0xa   : > { %p1921_p4 = por %p2450_p1, %p45_p0  ;;  %p208_p7 = scmp.lt.s32.totalorder %s1837_s27, 3 }
   0xb   : > { %p1926_p6 = por %p201_p3, %p45_p0  ;;  %s1839_s10 = smov [#allocation5]  }
   0xc   : > { %s2456_s30 = scalar_select %p1921_p4, 1, 0 }
   0xd   : > { %s2457_s8 = scalar_select %p1926_p6, 1, 0 }
   0xe   : > { %p1931_p8 = pnand %p1085_p5, %p208_p7  ;;  %s220_s11 = sshll.u32 %s1839_s10, 4  ;;  %s1935_s11 = int_to_ptr.vmem [resolvable:$true] %s220_s11 }
   0xf   : > { %2458 = sst [smem:[#allocation15_spill]] %s2457_s8  ;;  %s1840_s13 = smov [#allocation7]  }
  0x10   : > { %s2459_s9 = scalar_select %p1931_p8, 1, 0 }
  0x11   : > { %p1581_p9 = pneg %p1931_p8  ;;  %s236_s14 = sshll.u32 %s1840_s13, 4  ;;  %s1946_s14 = int_to_ptr.vmem [resolvable:$true] %s236_s14 }
  0x12   : > { %s1841_s15 = smov [#allocation8]   ;;  %s1649_s19 = scalar_lea.hbm %s2443_s1, 2048 }
  0x13   : > { %p1942_p11 = pnand %p1581_p9, %p2450_p1  ;;  %s1948_s16 = sshll.u32 %s1841_s15, 4  ;;  %s253_s16 = int_to_ptr.vmem [resolvable:$true] %s1948_s16 }
  0x14   : > { %p1650_p12 = scmp.ne.s32.totalorder %s2443_s1, %s1649_s19  ;;  %p1656_p5 = scmp.lt.u32.totalorder %s1649_s19, %s2443_s1 }
  0x15   : > { %p1958_p13 = pneg %p1942_p11 }
  0x17   : > { %p1652_p0 = pnand %p1958_p13, %p1650_p12 }
  0x19   : > { %p1653_p3 = pneg %p1652_p0 }
  0x1b   : > { %p1658_p7 = pnand %p1656_p5, %p1653_p3 }
  0x1d   : > { %1661 = shalt.err (!%p1658_p7)
}
  0x1e   : > { %s1662_s10 = scalar_lea.vmem %s1935_s11, 2048  ;;  %p1670_p2 = scmp.lt.s32.totalorder %s1935_s11, %s1935_s11 }
  0x1f   : > { %p1663_p9 = scmp.ne.s32.totalorder %s1935_s11, %s1662_s10  ;;  %p1671_p6 = scmp.lt.s32.totalorder %s1662_s10, %s1662_s10 }
  0x21   : > { %p1665_p10 = pnand %p1663_p9, %p1958_p13  ;;  %p1672_p12 = por %p1671_p6, %p1670_p2 }
  0x23   : > { %p1666_p1 = pneg %p1665_p10 }
  0x25   : > { %p1673_p0 = pnand %p1672_p12, %p1666_p1 }
  0x27   : > { %1676 = shalt.err (!%p1673_p0)
}
  0x28   : > { %s2454_s13 = smov 128   ;;  %s2455_s15 = smov 8  }
  0x29   : > { %1584 = dma.hbm_to_vmem [thread:$0]  (!%p1942_p11), %s2443_s1, 2048, %s1935_s11, [#allocation6], %s2454_s13, %s2454_s13, %s2455_s15  }
  0x2a   : > { %s1677_s21 = scalar_lea.hbm %s2445_s3, 2048 }
  0x2b   : > { %p1678_p1 = scmp.ne.s32.totalorder %s2445_s3, %s1677_s21  ;;  %p1684_p10 = scmp.lt.u32.totalorder %s1677_s21, %s2445_s3 }
  0x2d   : > { %p1680_p2 = pnand %p1678_p1, %p1958_p13 }
  0x2f   : > { %p1681_p6 = pneg %p1680_p2 }
  0x31   : > { %p1686_p3 = pnand %p1684_p10, %p1681_p6 }
  0x33   : > { %1689 = shalt.err (!%p1686_p3)
}
  0x34   : > { %s1690_s11 = scalar_lea.vmem %s1946_s14, 2048  ;;  %p1698_p12 = scmp.lt.s32.totalorder %s1946_s14, %s1946_s14 }
  0x35   : > { %p1691_p5 = scmp.ne.s32.totalorder %s1946_s14, %s1690_s11  ;;  %p1699_p0 = scmp.lt.s32.totalorder %s1690_s11, %s1690_s11 }
  0x37   : > { %p1693_p7 = pnand %p1691_p5, %p1958_p13  ;;  %p1700_p1 = por %p1699_p0, %p1698_p12 }
  0x39   : > { %p1694_p9 = pneg %p1693_p7 }
  0x3b   : > { %p1701_p2 = pnand %p1700_p1, %p1694_p9 }
  0x3d   : > { %1704 = shalt.err (!%p1701_p2)
}
  0x3e   : > { %1587 = dma.hbm_to_vmem [thread:$0]  (!%p1942_p11), %s2445_s3, 2048, %s1946_s14, [#allocation6], %s2454_s13, %s2454_s13, %s2455_s15  }
  0x3f   : > { %s1705_s20 = scalar_lea.hbm %s2447_s5, 2048 }
  0x40   : > { %p1706_p6 = scmp.ne.s32.totalorder %s2447_s5, %s1705_s20  ;;  %p1712_p5 = scmp.lt.u32.totalorder %s1705_s20, %s2447_s5 }
  0x42   : > { %p1708_p10 = pnand %p1706_p6, %p1958_p13 }
  0x44   : > { %p1709_p3 = pneg %p1708_p10 }
  0x46   : > { %p1714_p7 = pnand %p1712_p5, %p1709_p3 }
  0x48   : > { %1717 = shalt.err (!%p1714_p7)
}
  0x49   : > { %s1718_s11 = scalar_lea.vmem %s253_s16, 2048  ;;  %p1726_p1 = scmp.lt.s32.totalorder %s253_s16, %s253_s16 }
  0x4a   : > { %p1719_p9 = scmp.ne.s32.totalorder %s253_s16, %s1718_s11  ;;  %p1727_p2 = scmp.lt.s32.totalorder %s1718_s11, %s1718_s11 }
  0x4c   : > { %p1721_p12 = pnand %p1719_p9, %p1958_p13  ;;  %p1728_p4 = por %p1727_p2, %p1726_p1 }
  0x4e   : > { %p1722_p0 = pneg %p1721_p12 }
  0x50   : > { %p1729_p8 = pnand %p1728_p4, %p1722_p0 }
  0x52   : > { %1732 = shalt.err (!%p1729_p8)
}
  0x53   : > { %1590 = dma.hbm_to_vmem [thread:$0]  (!%p1942_p11), %s2447_s5, 2048, %s253_s16, [#allocation9], %s2454_s13, %s2454_s13, %s2455_s15  }
  0x54   : > { %s2031_s22 = sadd.s32 1, %s1837_s27   ;;  %s32_s17 = sadd.s32 1, %s1833_s26 }
  0x55   : > { %s29_s12 = ssub.s32 %s1837_s27, %s2031_s22  ;;  %p39_p8 = scmp.ne.s32.totalorder %s1833_s26, %s1829_s25 }
  0x56   : > { %p30_p4 = scmp.eq.s32.totalorder %s29_s12, 0  ;;  %p40_p13 = scmp.eq.s32.totalorder %s1837_s27, 0 }
  0x57   : > { %p1602_p6 = scmp.lt.s32.totalorder %s1837_s27, 2  ;;  %p2462_p3 = scmp.eq.s32.totalorder %s1912_s28, 1 }
  0x58   : > { %s2041_s18 = scalar_select %p30_p4, %s1833_s26, %s32_s17  }
  0x59   : > { %p41_p10 = por %p40_p13, %p39_p8  ;;  %p2045_p5 = por %p2462_p3, %p39_p8 }
  0x5a   : > { %s269_s20 = sand.u32 1, %s1833_s26   ;;  %s1101_s21 = smul.u32 2432, %s1837_s27 }
  0x5b   : > { %s1563_s16 = smul.u32 152, %s269_s20  ;;  %p2051_p11 = pnand %p1602_p6, %p41_p10 }
  0x5c   : > { %s2058_s11 = scalar_lea.hbm %s2442_s0, %s1101_s21  ;;  %s2062_s12 = scalar_lea.sflag [#allocation3], %s269_s20 }
  0x5d   : > { %s273_s14 = scalar_lea.vmem [#allocation2], %s1563_s16  ;;  %s1733_s17 = scalar_lea.hbm %s2058_s11, 2432 }
  0x5e   : > { %s280_s8 = sshll.u32 %s273_s14, 4  ;;  %p1734_p7 = scmp.ne.s32.totalorder %s2058_s11, %s1733_s17  ;;  %s2060_s8 = int_to_ptr.vmem [resolvable:$true] %s280_s8 }
  0x5f   : > { %p1735_p9 = pneg %p2051_p11  ;;  %s1738_s10 = scalar_lea.hbm %s2442_s0, 4864 }
  0x60   : > { %p1739_p1 = scmp.lt.u32.totalorder %s2058_s11, %s2442_s0  ;;  %p1740_p2 = scmp.lt.u32.totalorder %s1738_s10, %s1733_s17 }
  0x61   : > { %p1736_p12 = pnand %p1735_p9, %p1734_p7  ;;  %p1742_p8 = scmp.lt.u32.totalorder %s1733_s17, %s2058_s11 }
  0x62   : > { %p1741_p4 = por %p1740_p2, %p1739_p1 }
  0x63   : > { %p1737_p0 = pneg %p1736_p12 }
  0x64   : > { %p1743_p13 = por %p1742_p8, %p1741_p4 }
  0x66   : > { %p1744_p6 = pnand %p1743_p13, %p1737_p0 }
  0x68   : > { %1747 = shalt.err (!%p1744_p6)
}
  0x69   : > { %s1748_s20 = scalar_lea.vmem %s2060_s8, 2432  ;;  %s1844_s16 = smov [#allocation2]  }
  0x6a   : > { %p1749_p10 = scmp.ne.s32.totalorder %s2060_s8, %s1748_s20  ;;  %s1753_s14 = sshll.u32 %s1844_s16, 4  ;;  %s1754_s14 = int_to_ptr.vmem [resolvable:$false] %s1753_s14 }
  0x6b   : > { %s1755_s13 = scalar_lea.vmem %s1754_s14, 4864  ;;  %p1756_p12 = scmp.lt.s32.totalorder %s2060_s8, %s1754_s14 }
  0x6c   : > { %p1751_p3 = pnand %p1749_p10, %p1735_p9  ;;  %p1757_p1 = scmp.lt.s32.totalorder %s1755_s13, %s1748_s20 }
  0x6e   : > { %p1752_p7 = pneg %p1751_p3  ;;  %p1758_p2 = por %p1757_p1, %p1756_p12 }
  0x70   : > { %p1759_p4 = pnand %p1758_p2, %p1752_p7 }
  0x72   : > { %1762 = shalt.err (!%p1759_p4)
}
  0x73   : > { %s2465_s15 = smov 8   ;;  %s2466_s17 = smov 128  }
  0x74   : > { %1594 = dma.hbm_to_vmem [thread:$0]  (!%p2051_p11), %s2058_s11, 2432, %s2060_s8, %s2062_s12, %s2466_s17, %s2466_s17, %s2465_s15  }
  0x75   : > { %p2467_p9 = scmp.ne.s32.totalorder %s2459_s9, 0 }
  0x76   : > { %s2096_s21 = sand.u32 (!%p2467_p9), 1, %s1829_s25   ;;  %p2468_p0 = scmp.ne.s32.totalorder (!%p2467_p9), %s2456_s30, 0 }
  0x77   : > { %292 = sbr.rel (%p2467_p9) target bundleno = 902 (0x386), region = 48  ;;  %s295_s10 = scalar_lea.sflag (!%p2467_p9), [#allocation3], %s2096_s21 }
  0x78   : > { %s1564_s29 = smul.u32 (!%p2467_p9), 152, %s2096_s21 }
  0x7a   : > { %s2102_s23 = scalar_lea.vmem (!%p2467_p9), [#allocation2], %s1564_s29 }
  0x7e   : > { %1808 = dma.done.wait (%p2468_p0), %s295_s10, 2432  }
  0x7f   : > { %1810 = vsyncadd (%p2468_p0), %s295_s10, 4294964864  ;;  %p2469_p11 = scmp.eq.s32.totalorder %s1912_s28, 0 }
  0x81   : > { %1812 = dma.done.wait (%p2469_p11), [#allocation6], 4096   ;;  %p2470_p8 = pmov %p2469_p11 }
  0x83   : > { %1814 = vsyncadd (%p2470_p8), [#allocation6], 4294963200  ;;  %p2471_p13 = pmov %p2470_p8 }
  0x84   : > { %p2472_p6 = pmov %p2470_p8 }
  0x85   : > { %1816 = dma.done.wait (%p2471_p13), [#allocation9], 2048  }
  0x86   : > { %1818 = vsyncadd (%p2472_p6), [#allocation9], 4294965248  ;;  %v1845_v0 = vmov 0.0|0.0   ;;  %vm1846_vm0 = vmmov 0   ;;  %v1847_v1 = vmov 0.0   ;;  %v362_v2 = vld [vmem:[#allocation5] sm:$0xff] }
  0x87   : > { %1475 = vmatprep.subr.bf16.mxu0 %v1845_v0  ;;  %1240 = vmatprep.mubr.msk.f32.mxu0 %vm1846_vm0, %v1847_v1  ;;  %v363_v3 = vld [vmem:[#allocation5 + $0x8] sm:$0xff]  ;;  %v364_v4 = vld [vmem:[#allocation5 + $0x10] sm:$0xff]  ;;  %v365_v6 = vld [vmem:[#allocation5 + $0x18] sm:$0xff]  ;;  %s2352_s16 = scalar_lea.vmem [#allocation10], %s1564_s29  ;;  %s1102_s14 = smul.u32 2432, %s1912_s28 }
  0x88   : > { %1547 = vmatprep.subr.bf16.mxu1 %v1845_v0  ;;  %1270 = vmatprep.mubr.msk.f32.mxu1 %vm1846_vm0, %v1847_v1  ;;  %v1476_v5 = vpack.c.bf16 %v363_v3, %v362_v2  ;;  %v1479_v7 = vpack.c.bf16 %v365_v6, %v364_v4  ;;  %v366_v8 = vld [vmem:[#allocation5 + $0x20] sm:$0xff]  ;;  %v367_v9 = vld [vmem:[#allocation5 + $0x28] sm:$0xff]  ;;  %v368_v11 = vld [vmem:[#allocation5 + $0x30] sm:$0xff]  ;;  %s982_s13 = sshll.u32 %s2352_s16, 4  ;;  %s969_s28 = scalar_lea.sflag [#allocation4], %s2096_s21  ;;  %s2396_s13 = int_to_ptr.vmem [resolvable:$true] %s982_s13 }
  0x89   : > { %v1482_v10 = vpack.c.bf16 %v367_v9, %v366_v8  ;;  %v369_v12 = vld [vmem:[#allocation5 + $0x38] sm:$0xff]  ;;  %v370_v14 = vld [vmem:[#allocation5 + $0x40] sm:$0xff]  ;;  %v371_v15 = vld [vmem:[#allocation5 + $0x48] sm:$0xff]  ;;  %s2394_s29 = scalar_lea.hbm %s2449_s7, %s1102_s14  ;;  %s1763_s10 = scalar_lea.vmem %s2396_s13, 2432 }
  0x8a   : > { %1477 = vmatpush3.bf16.msra.mxu0 %v1476_v5  ;;  %1555 = vmatpush3.bf16.msra.mxu1 %v1476_v5  ;;  %v1485_v13 = vpack.c.bf16 %v369_v12, %v368_v11  ;;  %v1488_v16 = vpack.c.bf16 %v371_v15, %v370_v14  ;;  %v372_v17 = vld [vmem:[#allocation5 + $0x50] sm:$0xff]  ;;  %v373_v18 = vld [vmem:[#allocation5 + $0x58] sm:$0xff]  ;;  %v374_v20 = vld [vmem:[#allocation5 + $0x60] sm:$0xff]  ;;  %p1764_p10 = scmp.ne.s32.totalorder %s2396_s13, %s1763_s10 }
  0x8b   : > { %1478 = vmatprep.subr.bf16.mxu0 %v1845_v0  ;;  %1548 = vmatprep.subr.bf16.mxu1 %v1845_v0  ;;  %v1491_v19 = vpack.c.bf16 %v373_v18, %v372_v17  ;;  %v375_v21 = vld [vmem:[#allocation5 + $0x68] sm:$0xff]  ;;  %v376_v23 = vld [vmem:[#allocation5 + $0x70] sm:$0xff]  ;;  %v377_v24 = vld [vmem:[#allocation5 + $0x78] sm:$0xff] }
  0x8c   : > { %v1494_v22 = vpack.c.bf16 %v375_v21, %v374_v20  ;;  %v1497_v25 = vpack.c.bf16 %v377_v24, %v376_v23  ;;  %v564_v26 = vld [vmem:[#allocation7] sm:$0xff]  ;;  %v565_v27 = vld [vmem:[#allocation7 + $0x8] sm:$0xff]  ;;  %v566_v31 = vld [vmem:[#allocation7 + $0x10] sm:$0xff]  ;;  %p1765_p3 = pnand %p1764_p10, %p2045_p5 }
  0x8d   : > { %v343_v28 = vld [vmem:[%s2102_s23] sm:$0xff]  ;;  %v353_v29 = vld [vmem:[%s2102_s23 + $0x50] sm:$0xff]  ;;  %v1500_v30 = vpack.c.bf16 %v565_v27, %v564_v26  ;;  %v344_v33 = vld [vmem:[%s2102_s23 + $0x8] sm:$0xff] }
  0x8e   : > { %1480 = vmatpush3.bf16.msra.mxu0 %v1479_v7  ;;  %1556 = vmatpush3.bf16.msra.mxu1 %v1479_v7  ;;  %v567_v32 = vld [vmem:[#allocation7 + $0x18] sm:$0xff]  ;;  %v354_v34 = vld [vmem:[%s2102_s23 + $0x58] sm:$0xff]  ;;  %v355_v39 = vld [vmem:[%s2102_s23 + $0x60] sm:$0xff]  ;;  %p1766_p7 = pneg %p1765_p3 }
  0x8f   : > { %1481 = vmatprep.subr.bf16.mxu0 %v1845_v0  ;;  %1549 = vmatprep.subr.bf16.mxu1 %v1845_v0  ;;  %v1503_v35 = vpack.c.bf16 %v567_v32, %v566_v31  ;;  %v568_v36 = vld [vmem:[#allocation7 + $0x20] sm:$0xff]  ;;  %v569_v37 = vld [vmem:[#allocation7 + $0x28] sm:$0xff]  ;;  %v570_v41 = vld [vmem:[#allocation7 + $0x30] sm:$0xff] }
  0x90   : > { %v345_v38 = vld [vmem:[%s2102_s23 + $0x10] sm:$0xff]  ;;  %v1506_v40 = vpack.c.bf16 %v569_v37, %v568_v36  ;;  %v346_v43 = vld [vmem:[%s2102_s23 + $0x18] sm:$0xff]  ;;  %v356_v44 = vld [vmem:[%s2102_s23 + $0x68] sm:$0xff] }
  0x91   : > { %v571_v42 = vld [vmem:[#allocation7 + $0x38] sm:$0xff]  ;;  %v572_v46 = vld [vmem:[#allocation7 + $0x40] sm:$0xff]  ;;  %v573_v47 = vld [vmem:[#allocation7 + $0x48] sm:$0xff] }
  0x92   : > { %1483 = vmatpush3.bf16.msra.mxu0 %v1482_v10  ;;  %1557 = vmatpush3.bf16.msra.mxu1 %v1482_v10  ;;  %v1509_v45 = vpack.c.bf16 %v571_v42, %v570_v41  ;;  %v347_v48 = vld [vmem:[%s2102_s23 + $0x20] sm:$0xff]  ;;  %v357_v49 = vld [vmem:[%s2102_s23 + $0x70] sm:$0xff]  ;;  %v1512_v50 = vpack.c.bf16 %v573_v47, %v572_v46  ;;  %v348_v53 = vld [vmem:[%s2102_s23 + $0x28] sm:$0xff] }
  0x93   : > { %1484 = vmatprep.subr.bf16.mxu0 %v1845_v0  ;;  %1550 = vmatprep.subr.bf16.mxu1 %v1845_v0  ;;  %v574_v51 = vld [vmem:[#allocation7 + $0x50] sm:$0xff]  ;;  %v575_v52 = vld [vmem:[#allocation7 + $0x58] sm:$0xff]  ;;  %v358_v54 = vld [vmem:[%s2102_s23 + $0x78] sm:$0xff] }
  0x94   : > { %v1515_v55 = vpack.c.bf16 %v575_v52, %v574_v51  ;;  %v576_v56 = vld [vmem:[#allocation7 + $0x60] sm:$0xff]  ;;  %v577_v57 = vld [vmem:[#allocation7 + $0x68] sm:$0xff]  ;;  %v360_v62 = vld [vmem:[%s2102_s23 + $0x88] sm:$0xff] }
  0x95   : > { %v349_v58 = vld [vmem:[%s2102_s23 + $0x30] sm:$0xff]  ;;  %v359_v59 = vld [vmem:[%s2102_s23 + $0x80] sm:$0xff]  ;;  %v1518_v60 = vpack.c.bf16 %v577_v57, %v576_v56  ;;  %v350_v61 = vld [vmem:[%s2102_s23 + $0x38] sm:$0xff] }
  0x96   : > { %1486 = vmatpush3.bf16.msra.mxu0 %v1485_v13  ;;  %1558 = vmatpush3.bf16.msra.mxu1 %v1485_v13  ;;  %v351_v63 = vld [vmem:[%s2102_s23 + $0x40] sm:$0xff]  ;;  %v361_v2 = vld [vmem:[%s2102_s23 + $0x90] sm:$0xff]  ;;  %v352_v3 = vld [vmem:[%s2102_s23 + $0x48] sm:$0xff]  ;;  %s1848_s23 = smov [#allocation10]  }
  0x97   : > { %1487 = vmatprep.subr.bf16.mxu0 %v1845_v0  ;;  %1551 = vmatprep.subr.bf16.mxu1 %v1845_v0  ;;  %v578_v4 = vld [vmem:[#allocation7 + $0x70] sm:$0xff]  ;;  %v579_v5 = vld [vmem:[#allocation7 + $0x78] sm:$0xff]  ;;  %v766_v7 = vld [vmem:[#allocation8] sm:$0xff]  ;;  %s1767_s30 = sshll.u32 %s1848_s23, 4  ;;  %s1768_s30 = int_to_ptr.vmem [resolvable:$false] %s1767_s30 }
  0x98   : > { %v1521_v6 = vpack.c.bf16 %v579_v5, %v578_v4  ;;  %v767_v8 = vld [vmem:[#allocation8 + $0x8] sm:$0xff]  ;;  %v768_v9 = vld [vmem:[#allocation8 + $0x10] sm:$0xff]  ;;  %v769_v11 = vld [vmem:[#allocation8 + $0x18] sm:$0xff]  ;;  %s1769_s9 = scalar_lea.vmem %s1768_s30, 4864  ;;  %p1770_p12 = scmp.lt.s32.totalorder %s2396_s13, %s1768_s30 }
  0x99   : > { %v1524_v10 = vpack.c.bf16 %v767_v8, %v766_v7  ;;  %v1527_v12 = vpack.c.bf16 %v769_v11, %v768_v9  ;;  %v770_v13 = vld [vmem:[#allocation8 + $0x20] sm:$0xff]  ;;  %v771_v14 = vld [vmem:[#allocation8 + $0x28] sm:$0xff]  ;;  %v773_v17 = vld [vmem:[#allocation8 + $0x38] sm:$0xff]  ;;  %p1771_p1 = scmp.lt.s32.totalorder %s1769_s9, %s1763_s10 }
  0x9a   : > { %1489 = vmatpush3.bf16.msra.mxu0 %v1488_v16  ;;  %1559 = vmatpush3.bf16.msra.mxu1 %v1488_v16  ;;  %v1530_v15 = vpack.c.bf16 %v771_v14, %v770_v13  ;;  %v772_v16 = vld [vmem:[#allocation8 + $0x30] sm:$0xff]  ;;  %v775_v20 = vld [vmem:[#allocation8 + $0x48] sm:$0xff]  ;;  %v777_v23 = vld [vmem:[#allocation8 + $0x58] sm:$0xff] }
  0x9b   : > { %1490 = vmatprep.subr.bf16.mxu0 %v1845_v0  ;;  %1552 = vmatprep.subr.bf16.mxu1 %v1845_v0  ;;  %v1533_v18 = vpack.c.bf16 %v773_v17, %v772_v16  ;;  %v779_v26 = vld [vmem:[#allocation8 + $0x68] sm:$0xff]  ;;  %p1772_p2 = por %p1771_p1, %p1770_p12 }
  0x9d   : > { %p1773_p4 = pnand %p1772_p2, %p1766_p7 }
  0x9e   : > { %1492 = vmatpush3.bf16.msra.mxu0 %v1491_v19  ;;  %1560 = vmatpush3.bf16.msra.mxu1 %v1491_v19  ;;  %v774_v19 = vld [vmem:[#allocation8 + $0x40] sm:$0xff] }
  0x9f   : > { %1493 = vmatprep.subr.bf16.mxu0 %v1845_v0  ;;  %1553 = vmatprep.subr.bf16.mxu1 %v1845_v0  ;;  %v1536_v21 = vpack.c.bf16 %v775_v20, %v774_v19 }
  0xa2   : > { %1495 = vmatpush3.bf16.msra.mxu0 %v1494_v22  ;;  %1561 = vmatpush3.bf16.msra.mxu1 %v1494_v22  ;;  %v776_v22 = vld [vmem:[#allocation8 + $0x50] sm:$0xff] }
  0xa3   : > { %1496 = vmatprep.subr.bf16.mxu0 %v1845_v0  ;;  %1554 = vmatprep.subr.bf16.mxu1 %v1845_v0  ;;  %v1539_v24 = vpack.c.bf16 %v777_v23, %v776_v22 }
  0xa6   : > { %1498 = vmatpush3.bf16.msra.mxu0 %v1497_v25  ;;  %1562 = vmatpush3.bf16.msra.mxu1 %v1497_v25  ;;  %v778_v25 = vld [vmem:[#allocation8 + $0x60] sm:$0xff] }
  0xa7   : > { %1499 = vmatprep.subr.bf16.mxu1 %v1845_v0  ;;  %1523 = vmatprep.subr.bf16.mxu0 %v1845_v0  ;;  %v1542_v27 = vpack.c.bf16 %v779_v26, %v778_v25 }
  0xa9   : > { %1241 = vmatmul.mubr.f32.vlgmr.msra.gmra.mrb[0].mxu0 %v343_v28  ;;  %1271 = vmatmul.mubr.f32.vlgmr.msra.gmra.mrb[0].mxu1 %v353_v29  ;;  %v2212_v28 = vld [vmem:[%s2444_s2] ss:$0 sm:$0xff] }
  0xaa   : > { %1243 = vmatprep.mubr.msk.f32.mxu0 %vm1846_vm0, %v1847_v1  ;;  %1273 = vmatprep.mubr.msk.f32.mxu1 %vm1846_vm0, %v1847_v1 }
  0xab   : > { %1501 = vmatpush3.bf16.msra.mxu1 %v1500_v30  ;;  %1525 = vmatpush3.bf16.msra.mxu0 %v1524_v10 }
  0xac   : > { %1502 = vmatprep.subr.bf16.mxu1 %v1845_v0  ;;  %1526 = vmatprep.subr.bf16.mxu0 %v1845_v0 }
  0xad   : > { %1244 = vmatmul.mubr.f32.gmra.mrb[2].mxu0 %v344_v33  ;;  %1274 = vmatmul.mubr.f32.gmra.mrb[2].mxu1 %v354_v34 }
  0xae   : > { %1246 = vmatprep.mubr.msk.f32.mxu0 %vm1846_vm0, %v1847_v1  ;;  %1276 = vmatprep.mubr.msk.f32.mxu1 %vm1846_vm0, %v1847_v1 }
  0xaf   : > { %1504 = vmatpush3.bf16.msra.mxu1 %v1503_v35  ;;  %1528 = vmatpush3.bf16.msra.mxu0 %v1527_v12 }
  0xb0   : > { %1505 = vmatprep.subr.bf16.mxu1 %v1845_v0  ;;  %1529 = vmatprep.subr.bf16.mxu0 %v1845_v0 }
  0xb1   : > { %1247 = vmatmul.mubr.f32.gmra.mrb[4].mxu0 %v345_v38  ;;  %1277 = vmatmul.mubr.f32.gmra.mrb[4].mxu1 %v355_v39 }
  0xb2   : > { %1249 = vmatprep.mubr.msk.f32.mxu0 %vm1846_vm0, %v1847_v1  ;;  %1279 = vmatprep.mubr.msk.f32.mxu1 %vm1846_vm0, %v1847_v1 }
  0xb3   : > { %1507 = vmatpush3.bf16.msra.mxu1 %v1506_v40  ;;  %1531 = vmatpush3.bf16.msra.mxu0 %v1530_v15 }
  0xb4   : > { %1508 = vmatprep.subr.bf16.mxu1 %v1845_v0  ;;  %1532 = vmatprep.subr.bf16.mxu0 %v1845_v0 }
  0xb5   : > { %1250 = vmatmul.mubr.f32.gmra.mrb[6].mxu0 %v346_v43  ;;  %1280 = vmatmul.mubr.f32.gmra.mrb[6].mxu1 %v356_v44 }
  0xb6   : > { %1252 = vmatprep.mubr.msk.f32.mxu0 %vm1846_vm0, %v1847_v1  ;;  %1282 = vmatprep.mubr.msk.f32.mxu1 %vm1846_vm0, %v1847_v1 }
  0xb7   : > { %1510 = vmatpush3.bf16.msra.mxu1 %v1509_v45  ;;  %1534 = vmatpush3.bf16.msra.mxu0 %v1533_v18 }
  0xb8   : > { %1511 = vmatprep.subr.bf16.mxu1 %v1845_v0  ;;  %1535 = vmatprep.subr.bf16.mxu0 %v1845_v0 }
  0xb9   : > { %1253 = vmatmul.mubr.f32.gmra.mrb[8].mxu0 %v347_v48  ;;  %1283 = vmatmul.mubr.f32.gmra.mrb[8].mxu1 %v357_v49 }
  0xba   : > { %1255 = vmatprep.mubr.msk.f32.mxu0 %vm1846_vm0, %v1847_v1  ;;  %1285 = vmatprep.mubr.msk.f32.mxu1 %vm1846_vm0, %v1847_v1 }
  0xbb   : > { %1513 = vmatpush3.bf16.msra.mxu1 %v1512_v50  ;;  %1537 = vmatpush3.bf16.msra.mxu0 %v1536_v21 }
  0xbc   : > { %1514 = vmatprep.subr.bf16.mxu1 %v1845_v0  ;;  %1538 = vmatprep.subr.bf16.mxu0 %v1845_v0 }
  0xbd   : > { %1256 = vmatmul.mubr.f32.gmra.mrb[10].mxu0 %v348_v53  ;;  %1286 = vmatmul.mubr.f32.gmra.mrb[10].mxu1 %v358_v54 }
  0xbe   : > { %1258 = vmatprep.mubr.msk.f32.mxu0 %vm1846_vm0, %v1847_v1  ;;  %1288 = vmatprep.mubr.msk.f32.mxu1 %vm1846_vm0, %v1847_v1 }
  0xbf   : > { %1516 = vmatpush3.bf16.msra.mxu1 %v1515_v55  ;;  %1540 = vmatpush3.bf16.msra.mxu0 %v1539_v24 }
  0xc0   : > { %1517 = vmatprep.subr.bf16.mxu1 %v1845_v0  ;;  %1541 = vmatprep.subr.bf16.mxu0 %v1845_v0 }
  0xc1   : > { %1259 = vmatmul.mubr.f32.gmra.mrb[12].mxu0 %v349_v58  ;;  %1289 = vmatmul.mubr.f32.gmra.mrb[12].mxu1 %v359_v59 }
  0xc2   : > { %1261 = vmatprep.mubr.msk.f32.mxu0 %vm1846_vm0, %v1847_v1  ;;  %1291 = vmatprep.mubr.msk.f32.mxu1 %vm1846_vm0, %v1847_v1 }
  0xc3   : > { %1519 = vmatpush3.bf16.msra.mxu1 %v1518_v60  ;;  %1543 = vmatpush3.bf16.msra.mxu0 %v1542_v27 }
  0xc4   : > { %1520 = vmatprep.subr.bf16.mxu1 %v1845_v0  ;;  %1544 = vmatprep.subr.bf16.mxu0 %v1845_v0 }
  0xc5   : > { %1262 = vmatmul.mubr.f32.gmra.mrb[14].mxu0 %v350_v61  ;;  %1292 = vmatmul.mubr.f32.gmra.mrb[14].mxu1 %v360_v62 }
  0xc6   : > { %1264 = vmatprep.mubr.msk.f32.mxu0 %vm1846_vm0, %v1847_v1  ;;  %1294 = vmatprep.mubr.msk.f32.mxu1 %vm1846_vm0, %v1847_v1 }
  0xc7   : > { %1522 = vmatpush3.bf16.msra.mxu1 %v1521_v6 }
  0xc9   : > { %1265 = vmatmul.mubr.f32.gmra.mrb[16].mxu0 %v351_v63  ;;  %1295 = vmatmul.mubr.f32.gmra.mrb[16].mxu1 %v361_v2 }
  0xca   : > { %1267 = vmatprep.mubr.msk.f32.mxu0 %vm1846_vm0, %v1847_v1  ;;  %1329 = vmatprep.mubr.msk.f32.mxu1 %vm1846_vm0, %v1847_v1 }
  0xcd   : > { %1268 = vmatmul.mubr.f32.gmra.mrb[18].mxu0 %v352_v3 }
  0xce   : > { %1418 = vmatprep.mubr.msk.f32.mxu0 %vm1846_vm0, %v1847_v1 }
 0x17c   : > { %v451_v29 = vpop.f32.mrb[0].mxu0  ;;  %v2214_v30 = vpop.f32.mrb[0].mxu1 }
 0x17d   : > { %v452_v31 = vadd.f32 %v2212_v28, %v451_v29  ;;  %v1242_v32 = vpop.f32.mrb[1].mxu0  ;;  %v1272_v33 = vpop.f32.mrb[1].mxu1  ;;  %v502_v26 = vadd.f32 %v2212_v28, %v2214_v30 }
 0x17f   : > { %v545_v34 = vmax.f32 %v452_v31, 0.0  ;;  %v555_v29 = vmax.f32 %v502_v26, 0.0 }
 0x180   : > { %v456_v35 = vpop.f32.mrb[2].mxu0  ;;  %v2217_v36 = vpop.f32.mrb[2].mxu1 }
 0x181   : > { %v457_v37 = vadd.f32 %v2212_v28, %v456_v35  ;;  %v1245_v38 = vpop.f32.mrb[3].mxu0  ;;  %1330 = vmatmul.mubr.f32.vlgmr.msra.gmra.mrb[18].mxu1 %v545_v34  ;;  %v1275_v0 = vpop.f32.mrb[3].mxu1  ;;  %v507_v31 = vadd.f32 %v2212_v28, %v2217_v36 }
 0x182   : > { %1332 = vmatprep.mubr.msk.f32.mxu1 %vm1846_vm0, %v1847_v1 }
 0x183   : > { %v546_v39 = vmax.f32 %v457_v37, 0.0  ;;  %v556_v32 = vmax.f32 %v507_v31, 0.0 }
 0x184   : > { %v461_v40 = vpop.f32.mrb[4].mxu0  ;;  %v2222_v41 = vpop.f32.mrb[4].mxu1 }
 0x185   : > { %v462_v42 = vadd.f32 %v2212_v28, %v461_v40  ;;  %v1248_v43 = vpop.f32.mrb[5].mxu0  ;;  %1333 = vmatmul.mubr.f32.gmra.mrb[20].mxu1 %v546_v39  ;;  %v1278_v44 = vpop.f32.mrb[5].mxu1  ;;  %v512_v33 = vadd.f32 %v2212_v28, %v2222_v41 }
 0x186   : > { %1335 = vmatprep.mubr.msk.f32.mxu1 %vm1846_vm0, %v1847_v1  ;;  %v2287_v44 = vld [vmem:[%s2446_s4] ss:$0 sm:$0xff] }
 0x187   : > { %v547_v45 = vmax.f32 %v462_v42, 0.0  ;;  %v557_v30 = vmax.f32 %v512_v33, 0.0  ;;  %v781_v42 = vld [vmem:[#allocation8 + $0x78] sm:$0xff] }
 0x188   : > { %v466_v46 = vpop.f32.mrb[6].mxu0  ;;  %v2227_v47 = vpop.f32.mrb[6].mxu1 }
 0x189   : > { %v467_v48 = vadd.f32 %v2212_v28, %v466_v46  ;;  %v1251_v49 = vpop.f32.mrb[7].mxu0  ;;  %1336 = vmatmul.mubr.f32.gmra.mrb[22].mxu1 %v547_v45  ;;  %v1281_v50 = vpop.f32.mrb[7].mxu1  ;;  %v517_v34 = vadd.f32 %v2212_v28, %v2227_v47 }
 0x18a   : > { %1338 = vmatprep.mubr.msk.f32.mxu1 %vm1846_vm0, %v1847_v1 }
 0x18b   : > { %v548_v51 = vmax.f32 %v467_v48, 0.0  ;;  %v558_v35 = vmax.f32 %v517_v34, 0.0 }
 0x18c   : > { %v471_v52 = vpop.f32.mrb[8].mxu0  ;;  %v2232_v53 = vpop.f32.mrb[8].mxu1 }
 0x18d   : > { %v472_v54 = vadd.f32 %v2212_v28, %v471_v52  ;;  %v1254_v55 = vpop.f32.mrb[9].mxu0  ;;  %1339 = vmatmul.mubr.f32.gmra.mrb[24].mxu1 %v548_v51  ;;  %v1284_v56 = vpop.f32.mrb[9].mxu1  ;;  %v522_v36 = vadd.f32 %v2212_v28, %v2232_v53 }
 0x18e   : > { %1341 = vmatprep.mubr.msk.f32.mxu1 %vm1846_vm0, %v1847_v1 }
 0x18f   : > { %v549_v57 = vmax.f32 %v472_v54, 0.0  ;;  %v559_v37 = vmax.f32 %v522_v36, 0.0 }
 0x190   : > { %v476_v58 = vpop.f32.mrb[10].mxu0  ;;  %v526_v59 = vpop.f32.mrb[10].mxu1 }
 0x191   : > { %v477_v60 = vadd.f32 %v2212_v28, %v476_v58  ;;  %v1257_v61 = vpop.f32.mrb[11].mxu0  ;;  %1342 = vmatmul.mubr.f32.gmra.mrb[26].mxu1 %v549_v57  ;;  %v1287_v62 = vpop.f32.mrb[11].mxu1  ;;  %v527_v38 = vadd.f32 %v2212_v28, %v526_v59 }
 0x192   : > { %1344 = vmatprep.mubr.msk.f32.mxu1 %vm1846_vm0, %v1847_v1 }
 0x193   : > { %v550_v63 = vmax.f32 %v477_v60, 0.0  ;;  %v560_v0 = vmax.f32 %v527_v38, 0.0 }
 0x194   : > { %v481_v2 = vpop.f32.mrb[12].mxu0  ;;  %v531_v3 = vpop.f32.mrb[12].mxu1 }
 0x195   : > { %v482_v4 = vadd.f32 %v2212_v28, %v481_v2  ;;  %v1260_v5 = vpop.f32.mrb[13].mxu0  ;;  %1345 = vmatmul.mubr.f32.gmra.mrb[28].mxu1 %v550_v63  ;;  %v532_v6 = vadd.f32 %v2212_v28, %v531_v3  ;;  %v1290_v7 = vpop.f32.mrb[13].mxu1 }
 0x196   : > { %1347 = vmatprep.mubr.msk.f32.mxu1 %vm1846_vm0, %v1847_v1 }
 0x197   : > { %v551_v8 = vmax.f32 %v482_v4, 0.0  ;;  %v561_v39 = vmax.f32 %v532_v6, 0.0 }
 0x198   : > { %v486_v9 = vpop.f32.mrb[14].mxu0  ;;  %v536_v10 = vpop.f32.mrb[14].mxu1 }
 0x199   : > { %v487_v11 = vadd.f32 %v2212_v28, %v486_v9  ;;  %v1263_v12 = vpop.f32.mrb[15].mxu0  ;;  %1348 = vmatmul.mubr.f32.gmra.mrb[30].mxu1 %v551_v8  ;;  %v537_v13 = vadd.f32 %v2212_v28, %v536_v10  ;;  %v1293_v14 = vpop.f32.mrb[15].mxu1 }
 0x19a   : > { %1350 = vmatprep.mubr.msk.f32.mxu1 %vm1846_vm0, %v1847_v1 }
 0x19b   : > { %v552_v15 = vmax.f32 %v487_v11, 0.0  ;;  %v562_v40 = vmax.f32 %v537_v13, 0.0 }
 0x19c   : > { %v491_v16 = vpop.f32.mrb[16].mxu0  ;;  %v541_v17 = vpop.f32.mrb[16].mxu1 }
 0x19d   : > { %v492_v18 = vadd.f32 %v2212_v28, %v491_v16  ;;  %v1266_v19 = vpop.f32.mrb[17].mxu0  ;;  %1351 = vmatmul.mubr.f32.gmra.mrb[32].mxu1 %v552_v15  ;;  %v542_v20 = vadd.f32 %v2212_v28, %v541_v17  ;;  %v1296_v21 = vpop.f32.mrb[17].mxu1 }
 0x19e   : > { %1353 = vmatprep.mubr.msk.f32.mxu1 %vm1846_vm0, %v1847_v1 }
 0x19f   : > { %v553_v22 = vmax.f32 %v492_v18, 0.0  ;;  %v563_v41 = vmax.f32 %v542_v20, 0.0 }
 0x1a0   : > { %v496_v23 = vpop.f32.mrb[18].mxu0 }
 0x1a1   : > { %v497_v24 = vadd.f32 %v2212_v28, %v496_v23  ;;  %v1269_v25 = vpop.f32.mrb[19].mxu0  ;;  %1354 = vmatmul.mubr.f32.gmra.mrb[34].mxu1 %v553_v22  ;;  %v780_v28 = vld [vmem:[#allocation8 + $0x70] sm:$0xff] }
 0x1a2   : > { %1356 = vmatprep.mubr.msk.f32.mxu1 %vm1846_vm0, %v1847_v1  ;;  %v1545_v43 = vpack.c.bf16 %v781_v42, %v780_v28 }
 0x1a3   : > { %v554_v27 = vmax.f32 %v497_v24, 0.0 }
 0x1a4   : > { %1546 = vmatpush3.bf16.msra.mxu0 %v1545_v43 }
 0x1a5   : > { %1357 = vmatmul.mubr.f32.gmra.mrb[36].mxu1 %v554_v27 }
 0x1a6   : > { %1359 = vmatprep.mubr.msk.f32.mxu1 %vm1846_vm0, %v1847_v1 }
 0x1a9   : > { %1360 = vmatmul.mubr.f32.gmra.mrb[38].mxu1 %v555_v29 }
 0x1aa   : > { %1362 = vmatprep.mubr.msk.f32.mxu1 %vm1846_vm0, %v1847_v1 }
 0x1ad   : > { %1363 = vmatmul.mubr.f32.gmra.mrb[40].mxu1 %v556_v32 }
 0x1ae   : > { %1365 = vmatprep.mubr.msk.f32.mxu1 %vm1846_vm0, %v1847_v1 }
 0x1b1   : > { %1366 = vmatmul.mubr.f32.gmra.mrb[42].mxu1 %v557_v30 }
 0x1b2   : > { %1368 = vmatprep.mubr.msk.f32.mxu1 %vm1846_vm0, %v1847_v1 }
 0x1b5   : > { %1369 = vmatmul.mubr.f32.gmra.mrb[44].mxu1 %v558_v35 }
 0x1b6   : > { %1371 = vmatprep.mubr.msk.f32.mxu1 %vm1846_vm0, %v1847_v1 }
 0x1b9   : > { %1372 = vmatmul.mubr.f32.gmra.mrb[46].mxu1 %v559_v37 }
 0x1ba   : > { %1374 = vmatprep.mubr.msk.f32.mxu1 %vm1846_vm0, %v1847_v1 }
 0x1bd   : > { %1375 = vmatmul.mubr.f32.gmra.mrb[48].mxu1 %v560_v0 }
 0x1be   : > { %1377 = vmatprep.mubr.msk.f32.mxu1 %vm1846_vm0, %v1847_v1 }
 0x1c1   : > { %1378 = vmatmul.mubr.f32.gmra.mrb[50].mxu1 %v561_v39 }
 0x1c2   : > { %1380 = vmatprep.mubr.msk.f32.mxu1 %vm1846_vm0, %v1847_v1 }
 0x1c5   : > { %1381 = vmatmul.mubr.f32.gmra.mrb[52].mxu1 %v562_v40 }
 0x1c6   : > { %1383 = vmatprep.mubr.msk.f32.mxu1 %vm1846_vm0, %v1847_v1 }
 0x1c9   : > { %1384 = vmatmul.mubr.f32.gmra.mrb[54].mxu1 %v563_v41 }
 0x254   : > { %v653_v45 = vpop.f32.mrb[18].mxu1 }
 0x255   : > { %v654_v46 = vadd.f32 %v2287_v44, %v653_v45  ;;  %v1331_v47 = vpop.f32.mrb[19].mxu1 }
 0x257   : > { %v747_v48 = vmax.f32 %v654_v46, 0.0 }
 0x258   : > { %v658_v49 = vpop.f32.mrb[20].mxu1 }
 0x259   : > { %v659_v50 = vadd.f32 %v2287_v44, %v658_v49  ;;  %v1334_v51 = vpop.f32.mrb[21].mxu1  ;;  %1419 = vmatmul.mubr.f32.vlgmr.msra.gmra.mrb[20].mxu0 %v747_v48 }
 0x25a   : > { %1421 = vmatprep.mubr.msk.f32.mxu0 %vm1846_vm0, %v1847_v1 }
 0x25b   : > { %v748_v52 = vmax.f32 %v659_v50, 0.0 }
 0x25c   : > { %v663_v53 = vpop.f32.mrb[22].mxu1 }
 0x25d   : > { %v664_v54 = vadd.f32 %v2287_v44, %v663_v53  ;;  %v1337_v55 = vpop.f32.mrb[23].mxu1  ;;  %1422 = vmatmul.mubr.f32.gmra.mrb[22].mxu0 %v748_v52 }
 0x25e   : > { %1424 = vmatprep.mubr.msk.f32.mxu0 %vm1846_vm0, %v1847_v1 }
 0x25f   : > { %v749_v56 = vmax.f32 %v664_v54, 0.0 }
 0x260   : > { %v668_v57 = vpop.f32.mrb[24].mxu1 }
 0x261   : > { %v669_v58 = vadd.f32 %v2287_v44, %v668_v57  ;;  %v1340_v59 = vpop.f32.mrb[25].mxu1  ;;  %1425 = vmatmul.mubr.f32.gmra.mrb[24].mxu0 %v749_v56 }
 0x262   : > { %1427 = vmatprep.mubr.msk.f32.mxu0 %vm1846_vm0, %v1847_v1  ;;  %v2347_v59 = vld [vmem:[%s2448_s6] ss:$0 sm:$0xff] }
 0x263   : > { %v750_v60 = vmax.f32 %v669_v58, 0.0 }
 0x264   : > { %v673_v61 = vpop.f32.mrb[26].mxu1 }
 0x265   : > { %v674_v62 = vadd.f32 %v2287_v44, %v673_v61  ;;  %v1343_v63 = vpop.f32.mrb[27].mxu1  ;;  %1428 = vmatmul.mubr.f32.gmra.mrb[26].mxu0 %v750_v60 }
 0x266   : > { %1430 = vmatprep.mubr.msk.f32.mxu0 %vm1846_vm0, %v1847_v1 }
 0x267   : > { %v751_v2 = vmax.f32 %v674_v62, 0.0 }
 0x268   : > { %v678_v3 = vpop.f32.mrb[28].mxu1 }
 0x269   : > { %v679_v4 = vadd.f32 %v2287_v44, %v678_v3  ;;  %v1346_v5 = vpop.f32.mrb[29].mxu1  ;;  %1431 = vmatmul.mubr.f32.gmra.mrb[28].mxu0 %v751_v2 }
 0x26a   : > { %1433 = vmatprep.mubr.msk.f32.mxu0 %vm1846_vm0, %v1847_v1 }
 0x26b   : > { %v752_v6 = vmax.f32 %v679_v4, 0.0 }
 0x26c   : > { %v683_v7 = vpop.f32.mrb[30].mxu1 }
 0x26d   : > { %v684_v8 = vadd.f32 %v2287_v44, %v683_v7  ;;  %v1349_v9 = vpop.f32.mrb[31].mxu1  ;;  %1434 = vmatmul.mubr.f32.gmra.mrb[30].mxu0 %v752_v6 }
 0x26e   : > { %1436 = vmatprep.mubr.msk.f32.mxu0 %vm1846_vm0, %v1847_v1 }
 0x26f   : > { %v753_v10 = vmax.f32 %v684_v8, 0.0 }
 0x270   : > { %v688_v11 = vpop.f32.mrb[32].mxu1 }
 0x271   : > { %v689_v12 = vadd.f32 %v2287_v44, %v688_v11  ;;  %v1352_v13 = vpop.f32.mrb[33].mxu1  ;;  %1437 = vmatmul.mubr.f32.gmra.mrb[32].mxu0 %v753_v10 }
 0x272   : > { %1439 = vmatprep.mubr.msk.f32.mxu0 %vm1846_vm0, %v1847_v1 }
 0x273   : > { %v754_v14 = vmax.f32 %v689_v12, 0.0 }
 0x274   : > { %v693_v15 = vpop.f32.mrb[34].mxu1 }
 0x275   : > { %v694_v16 = vadd.f32 %v2287_v44, %v693_v15  ;;  %v1355_v17 = vpop.f32.mrb[35].mxu1  ;;  %1440 = vmatmul.mubr.f32.gmra.mrb[34].mxu0 %v754_v14 }
 0x276   : > { %1442 = vmatprep.mubr.msk.f32.mxu0 %vm1846_vm0, %v1847_v1 }
 0x277   : > { %v755_v18 = vmax.f32 %v694_v16, 0.0 }
 0x278   : > { %v698_v19 = vpop.f32.mrb[36].mxu1 }
 0x279   : > { %v699_v20 = vadd.f32 %v2287_v44, %v698_v19  ;;  %v1358_v21 = vpop.f32.mrb[37].mxu1  ;;  %1443 = vmatmul.mubr.f32.gmra.mrb[36].mxu0 %v755_v18 }
 0x27a   : > { %1445 = vmatprep.mubr.msk.f32.mxu0 %vm1846_vm0, %v1847_v1 }
 0x27b   : > { %v756_v22 = vmax.f32 %v699_v20, 0.0 }
 0x27c   : > { %v703_v23 = vpop.f32.mrb[38].mxu1 }
 0x27d   : > { %v704_v24 = vadd.f32 %v2287_v44, %v703_v23  ;;  %v1361_v25 = vpop.f32.mrb[39].mxu1  ;;  %1446 = vmatmul.mubr.f32.gmra.mrb[38].mxu0 %v756_v22 }
 0x27e   : > { %1448 = vmatprep.mubr.msk.f32.mxu0 %vm1846_vm0, %v1847_v1 }
 0x27f   : > { %v757_v26 = vmax.f32 %v704_v24, 0.0 }
 0x280   : > { %v708_v27 = vpop.f32.mrb[40].mxu1 }
 0x281   : > { %v709_v29 = vadd.f32 %v2287_v44, %v708_v27  ;;  %v1364_v31 = vpop.f32.mrb[41].mxu1  ;;  %1449 = vmatmul.mubr.f32.gmra.mrb[40].mxu0 %v757_v26 }
 0x282   : > { %1451 = vmatprep.mubr.msk.f32.mxu0 %vm1846_vm0, %v1847_v1 }
 0x283   : > { %v758_v32 = vmax.f32 %v709_v29, 0.0 }
 0x284   : > { %v713_v33 = vpop.f32.mrb[42].mxu1 }
 0x285   : > { %v714_v30 = vadd.f32 %v2287_v44, %v713_v33  ;;  %v1367_v34 = vpop.f32.mrb[43].mxu1  ;;  %1452 = vmatmul.mubr.f32.gmra.mrb[42].mxu0 %v758_v32 }
 0x286   : > { %1454 = vmatprep.mubr.msk.f32.mxu0 %vm1846_vm0, %v1847_v1 }
 0x287   : > { %v759_v35 = vmax.f32 %v714_v30, 0.0 }
 0x288   : > { %v718_v36 = vpop.f32.mrb[44].mxu1 }
 0x289   : > { %v719_v37 = vadd.f32 %v2287_v44, %v718_v36  ;;  %v1370_v38 = vpop.f32.mrb[45].mxu1  ;;  %1455 = vmatmul.mubr.f32.gmra.mrb[44].mxu0 %v759_v35 }
 0x28a   : > { %1457 = vmatprep.mubr.msk.f32.mxu0 %vm1846_vm0, %v1847_v1 }
 0x28b   : > { %v760_v0 = vmax.f32 %v719_v37, 0.0 }
 0x28c   : > { %v723_v39 = vpop.f32.mrb[46].mxu1 }
 0x28d   : > { %v724_v40 = vadd.f32 %v2287_v44, %v723_v39  ;;  %v1373_v41 = vpop.f32.mrb[47].mxu1  ;;  %1458 = vmatmul.mubr.f32.gmra.mrb[46].mxu0 %v760_v0 }
 0x28e   : > { %1460 = vmatprep.mubr.msk.f32.mxu0 %vm1846_vm0, %v1847_v1 }
 0x28f   : > { %v761_v28 = vmax.f32 %v724_v40, 0.0 }
 0x290   : > { %v728_v42 = vpop.f32.mrb[48].mxu1 }
 0x291   : > { %v729_v43 = vadd.f32 %v2287_v44, %v728_v42  ;;  %v1376_v45 = vpop.f32.mrb[49].mxu1  ;;  %1461 = vmatmul.mubr.f32.gmra.mrb[48].mxu0 %v761_v28 }
 0x292   : > { %1463 = vmatprep.mubr.msk.f32.mxu0 %vm1846_vm0, %v1847_v1 }
 0x293   : > { %v762_v46 = vmax.f32 %v729_v43, 0.0 }
 0x294   : > { %v733_v47 = vpop.f32.mrb[50].mxu1 }
 0x295   : > { %v734_v48 = vadd.f32 %v2287_v44, %v733_v47  ;;  %v1379_v49 = vpop.f32.mrb[51].mxu1  ;;  %1464 = vmatmul.mubr.f32.gmra.mrb[50].mxu0 %v762_v46 }
 0x296   : > { %1466 = vmatprep.mubr.msk.f32.mxu0 %vm1846_vm0, %v1847_v1 }
 0x297   : > { %v763_v50 = vmax.f32 %v734_v48, 0.0 }
 0x298   : > { %v738_v51 = vpop.f32.mrb[52].mxu1 }
 0x299   : > { %v739_v52 = vadd.f32 %v2287_v44, %v738_v51  ;;  %v1382_v53 = vpop.f32.mrb[53].mxu1  ;;  %1467 = vmatmul.mubr.f32.gmra.mrb[52].mxu0 %v763_v50 }
 0x29a   : > { %1469 = vmatprep.mubr.msk.f32.mxu0 %vm1846_vm0, %v1847_v1 }
 0x29b   : > { %v764_v54 = vmax.f32 %v739_v52, 0.0 }
 0x29c   : > { %v743_v55 = vpop.f32.mrb[54].mxu1 }
 0x29d   : > { %v744_v56 = vadd.f32 %v2287_v44, %v743_v55  ;;  %v1385_v57 = vpop.f32.mrb[55].mxu1  ;;  %1470 = vmatmul.mubr.f32.gmra.mrb[54].mxu0 %v764_v54 }
 0x29e   : > { %1472 = vmatprep.mubr.msk.f32.mxu0 %vm1846_vm0, %v1847_v1 }
 0x29f   : > { %v765_v58 = vmax.f32 %v744_v56, 0.0 }
 0x2a1   : > { %1473 = vmatmul.mubr.f32.gmra.mrb[56].mxu0 %v765_v58 }
 0x32c   : > { %v855_v60 = vpop.f32.mrb[20].mxu0 }
 0x32d   : > { %v856_v61 = vadd.f32 %v2347_v59, %v855_v60  ;;  %v1420_v62 = vpop.f32.mrb[21].mxu0 }
 0x32f   : > { %949 = vst [vmem:[%s2352_s16] sm:$0xff] %v856_v61 }
 0x330   : > { %v860_v1 = vpop.f32.mrb[22].mxu0 }
 0x331   : > { %v861_v44 = vadd.f32 %v2347_v59, %v860_v1  ;;  %v1423_v63 = vpop.f32.mrb[23].mxu0 }
 0x333   : > { %950 = vst [vmem:[%s2352_s16 + $0x8] sm:$0xff] %v861_v44 }
 0x334   : > { %v865_v2 = vpop.f32.mrb[24].mxu0 }
 0x335   : > { %v866_v3 = vadd.f32 %v2347_v59, %v865_v2  ;;  %v1426_v4 = vpop.f32.mrb[25].mxu0 }
 0x337   : > { %951 = vst [vmem:[%s2352_s16 + $0x10] sm:$0xff] %v866_v3 }
 0x338   : > { %v870_v5 = vpop.f32.mrb[26].mxu0 }
 0x339   : > { %v871_v6 = vadd.f32 %v2347_v59, %v870_v5  ;;  %v1429_v7 = vpop.f32.mrb[27].mxu0 }
 0x33b   : > { %952 = vst [vmem:[%s2352_s16 + $0x18] sm:$0xff] %v871_v6 }
 0x33c   : > { %v875_v8 = vpop.f32.mrb[28].mxu0 }
 0x33d   : > { %v876_v9 = vadd.f32 %v2347_v59, %v875_v8  ;;  %v1432_v10 = vpop.f32.mrb[29].mxu0 }
 0x33f   : > { %953 = vst [vmem:[%s2352_s16 + $0x20] sm:$0xff] %v876_v9 }
 0x340   : > { %v880_v11 = vpop.f32.mrb[30].mxu0 }
 0x341   : > { %v881_v12 = vadd.f32 %v2347_v59, %v880_v11  ;;  %v1435_v13 = vpop.f32.mrb[31].mxu0 }
 0x343   : > { %954 = vst [vmem:[%s2352_s16 + $0x28] sm:$0xff] %v881_v12 }
 0x344   : > { %v885_v14 = vpop.f32.mrb[32].mxu0 }
 0x345   : > { %v886_v15 = vadd.f32 %v2347_v59, %v885_v14  ;;  %v1438_v16 = vpop.f32.mrb[33].mxu0 }
 0x347   : > { %955 = vst [vmem:[%s2352_s16 + $0x30] sm:$0xff] %v886_v15 }
 0x348   : > { %v890_v17 = vpop.f32.mrb[34].mxu0 }
 0x349   : > { %v891_v18 = vadd.f32 %v2347_v59, %v890_v17  ;;  %v1441_v19 = vpop.f32.mrb[35].mxu0 }
 0x34b   : > { %956 = vst [vmem:[%s2352_s16 + $0x38] sm:$0xff] %v891_v18 }
 0x34c   : > { %v895_v20 = vpop.f32.mrb[36].mxu0 }
 0x34d   : > { %v896_v21 = vadd.f32 %v2347_v59, %v895_v20  ;;  %v1444_v22 = vpop.f32.mrb[37].mxu0 }
 0x34f   : > { %957 = vst [vmem:[%s2352_s16 + $0x40] sm:$0xff] %v896_v21 }
 0x350   : > { %v900_v23 = vpop.f32.mrb[38].mxu0 }
 0x351   : > { %v901_v24 = vadd.f32 %v2347_v59, %v900_v23  ;;  %v1447_v25 = vpop.f32.mrb[39].mxu0 }
 0x353   : > { %958 = vst [vmem:[%s2352_s16 + $0x48] sm:$0xff] %v901_v24 }
 0x354   : > { %v905_v26 = vpop.f32.mrb[40].mxu0 }
 0x355   : > { %v906_v27 = vadd.f32 %v2347_v59, %v905_v26  ;;  %v1450_v29 = vpop.f32.mrb[41].mxu0 }
 0x357   : > { %959 = vst [vmem:[%s2352_s16 + $0x50] sm:$0xff] %v906_v27 }
 0x358   : > { %v910_v31 = vpop.f32.mrb[42].mxu0 }
 0x359   : > { %v911_v32 = vadd.f32 %v2347_v59, %v910_v31  ;;  %v1453_v33 = vpop.f32.mrb[43].mxu0 }
 0x35b   : > { %960 = vst [vmem:[%s2352_s16 + $0x58] sm:$0xff] %v911_v32 }
 0x35c   : > { %v915_v30 = vpop.f32.mrb[44].mxu0 }
 0x35d   : > { %v916_v34 = vadd.f32 %v2347_v59, %v915_v30  ;;  %v1456_v35 = vpop.f32.mrb[45].mxu0 }
 0x35f   : > { %961 = vst [vmem:[%s2352_s16 + $0x60] sm:$0xff] %v916_v34 }
 0x360   : > { %v920_v36 = vpop.f32.mrb[46].mxu0 }
 0x361   : > { %v921_v37 = vadd.f32 %v2347_v59, %v920_v36  ;;  %v1459_v38 = vpop.f32.mrb[47].mxu0 }
 0x363   : > { %962 = vst [vmem:[%s2352_s16 + $0x68] sm:$0xff] %v921_v37 }
 0x364   : > { %v925_v0 = vpop.f32.mrb[48].mxu0 }
 0x365   : > { %v926_v39 = vadd.f32 %v2347_v59, %v925_v0  ;;  %v1462_v40 = vpop.f32.mrb[49].mxu0 }
 0x367   : > { %963 = vst [vmem:[%s2352_s16 + $0x70] sm:$0xff] %v926_v39 }
 0x368   : > { %v930_v41 = vpop.f32.mrb[50].mxu0 }
 0x369   : > { %v931_v28 = vadd.f32 %v2347_v59, %v930_v41  ;;  %v1465_v42 = vpop.f32.mrb[51].mxu0 }
 0x36b   : > { %964 = vst [vmem:[%s2352_s16 + $0x78] sm:$0xff] %v931_v28 }
 0x36c   : > { %v935_v43 = vpop.f32.mrb[52].mxu0 }
 0x36d   : > { %v936_v45 = vadd.f32 %v2347_v59, %v935_v43  ;;  %v1468_v46 = vpop.f32.mrb[53].mxu0 }
 0x36f   : > { %965 = vst [vmem:[%s2352_s16 + $0x80] sm:$0xff] %v936_v45 }
 0x370   : > { %v940_v47 = vpop.f32.mrb[54].mxu0 }
 0x371   : > { %v941_v48 = vadd.f32 %v2347_v59, %v940_v47  ;;  %v1471_v49 = vpop.f32.mrb[55].mxu0 }
 0x373   : > { %966 = vst [vmem:[%s2352_s16 + $0x88] sm:$0xff] %v941_v48 }
 0x374   : > { %v945_v50 = vpop.f32.mrb[56].mxu0 }
 0x375   : > { %v946_v51 = vadd.f32 %v2347_v59, %v945_v50  ;;  %v1474_v52 = vpop.f32.mrb[57].mxu0 }
 0x377   : > { %967 = vst [vmem:[%s2352_s16 + $0x90] sm:$0xff] %v946_v51 }
 0x378   : > { %1776 = shalt.err (!%p1773_p4)
}
 0x379   : > { %s1777_s11 = scalar_lea.hbm %s2394_s29, 2432  ;;  %s1781_s20 = scalar_lea.hbm %s2449_s7, 4864 }
 0x37a   : > { %p1778_p9 = scmp.ne.s32.totalorder %s2394_s29, %s1777_s11  ;;  %p1782_p8 = scmp.lt.u32.totalorder %s2394_s29, %s2449_s7 }
 0x37b   : > { %p1783_p13 = scmp.lt.u32.totalorder %s1781_s20, %s1777_s11  ;;  %p1785_p10 = scmp.lt.u32.totalorder %s1777_s11, %s2394_s29 }
 0x37c   : > { %p1779_p0 = pnand %p1778_p9, %p2045_p5 }
 0x37d   : > { %p1784_p6 = por %p1783_p13, %p1782_p8 }
 0x37e   : > { %p1780_p11 = pneg %p1779_p0 }
 0x37f   : > { %p1786_p3 = por %p1785_p10, %p1784_p6 }
 0x381   : > { %p1787_p7 = pnand %p1786_p3, %p1780_p11 }
 0x383   : > { %1790 = shalt.err (!%p1787_p7)
}
 0x384   : > { %s1849_s15 = smov 128   ;;  %s1850_s17 = smov 8  }
 0x385   : > { %1579 = dma.vmem_to_hbm [thread:$0]  (%p2045_p5), %s2396_s13, 2432, %s2394_s29, %s969_s28, %s1849_s15, %s1849_s15, %s1850_s17  }
 0x386 PF: > { %s2473_s10 = sld [smem:[#allocation15_spill]]  ;;  %s997_s23 = sand.u32 1, %s1825_s24  }
 0x387   : > { %p2475_p1 = scmp.ge.s32.totalorder %s1837_s27, 2  ;;  %s998_s30 = scalar_lea.sflag [#allocation4], %s997_s23 }
 0x38c   : > { %p2474_p12 = scmp.ne.s32.totalorder %s2473_s10, 0 }
 0x38e   : > { %p1596_p2 = pnand %p2475_p1, %p2474_p12 }
 0x390   : > { %1820 = dma.done.wait (!%p1596_p2), %s998_s30, 2432  }
 0x391   : > { %1822 = vsyncadd (!%p1596_p2), %s998_s30, 4294964864  ;;  %p22_p4 = scmp.ge.s32.totalorder %s2031_s22, 4   ;;  %s2476_s24 = smov %s1829_s25 }
 0x392   : > { %s2477_s25 = smov %s1833_s26  ;;  %s2478_s26 = smov %s2041_s18 }
 0x393   : > { %s2479_s27 = smov %s2031_s22  ;;  %24 = sbr.rel (!%p22_p4) target bundleno = 7 (0x7), region = 105 }
 0x39a   :  { %1003 = vsyncpa [#allocation3], 1 }
 0x39b   :  { %1005 = vsyncpa [#allocation3 + $0x1], 1 }
 0x39c   :  { %1006 = vsyncpa [#allocation6], 1 }
 0x39d   :  { %1007 = vsyncpa [#allocation9], 1 }
 0x39e   :  { %1008 = vsyncpa [#allocation4], 1 }
 0x39f   :  { %1010 = vsyncpa [#allocation4 + $0x1], 1 }

</bundles_post_ra>
